<compile_context>
chip_gen: v7x
topology: tpu7x:2x2x1
jax: 0.10.0
libtpu: 0.0.40
codegen_flags: <defaults>
</compile_context>

<pallas_src>
import functools

import jax
import jax.numpy as jnp
from jax.experimental import pallas as pl
from jax.experimental.pallas import tpu as pltpu

CH1, CH2, CH3 = 16, 32, 64
_VMEM_LIMIT = 32 * 1024 * 1024          # conservative: fits every generation


# ----------------------------------------------------------------------------
# small helpers
# ----------------------------------------------------------------------------
def _row_tile(m, target=512):
    """Largest multiple-of-16 divisor of m that is <= target (else full m)."""
    if m <= target:
        return m
    t = target - (target % 16)
    while t >= 16:
        if m % t == 0:
            return t
        t -= 16
    return m


def _ct_out_geometry(h, w, output_padding):
    """Output geometry of ConvTranspose2d(k=4, stride=2, padding=0)."""
    oph, opw = output_padding
    ho = (h - 1) * 2 + 4 + oph
    wo = (w - 1) * 2 + 4 + opw
    return ho, wo, -(-ho // 2), -(-wo // 2)      # Ho, Wo, Hq, Wq


# ----------------------------------------------------------------------------
# Pallas kernels
# ----------------------------------------------------------------------------
def _gemm_bias_kernel(a_ref, w_ref, b_ref, o_ref, *, apply_tanh):
    """o = a @ w + b (bias broadcast over rows), optional fused tanh."""
    acc = jnp.dot(a_ref[...], w_ref[...], preferred_element_type=jnp.float32)
    acc = acc + b_ref[...]
    if apply_tanh:
        acc = jnp.tanh(acc)
    o_ref[...] = acc.astype(o_ref.dtype)


def _fused_linear_kernel(x_ref, w1_ref, b1_ref, w2_ref, b2_ref, o_ref):
    """decoder_lin: (x @ W1 + b1) @ W2 + b2, one kernel, weights resident."""
    h = jnp.dot(x_ref[...], w1_ref[...], preferred_element_type=jnp.float32)
    h = h + b1_ref[...]
    o = jnp.dot(h, w2_ref[...], preferred_element_type=jnp.float32)
    o_ref[...] = o + b2_ref[...]


def _bn_stats_kernel(x_ref, sum_ref, ssq_ref):
    """Pass 1: accumulate per-(w,c) sum and sum-of-squares over row tiles."""
    @pl.when(pl.program_id(0) == 0)
    def _():
        sum_ref[...] = jnp.zeros_like(sum_ref)
        ssq_ref[...] = jnp.zeros_like(ssq_ref)

    x = x_ref[...].astype(jnp.float32)
    sum_ref[...] += jnp.sum(x, axis=0, keepdims=True)
    ssq_ref[...] += jnp.sum(x * x, axis=0, keepdims=True)


def _bn_apply_kernel(x_ref, sc_ref, sh_ref, o_ref):
    """Pass 2: y = tanh(x * scale + shift); scale/shift resident."""
    y = x_ref[...] * sc_ref[...] + sh_ref[...]
    o_ref[...] = jnp.tanh(y).astype(o_ref.dtype)


# ----------------------------------------------------------------------------
# Pallas wrappers
# ----------------------------------------------------------------------------
def pallas_gemm_bias(a, w, bias_row, *, apply_tanh=False, out_dtype=jnp.float32):
    """(M,K) @ (K,N) + bias, row-tiled parallel grid, resident weights."""
    m, k = a.shape
    n = w.shape[1]
    tm = _row_tile(m)
    out_bytes = m * n * jnp.dtype(out_dtype).itemsize
    in_bytes = (m * k * a.dtype.itemsize + k * n * w.dtype.itemsize
                + n * bias_row.dtype.itemsize)
    cost = pl.CostEstimate(flops=2 * m * k * n,
                           transcendentals=(m * n if apply_tanh else 0),
                           bytes_accessed=in_bytes + out_bytes)
    kern = functools.partial(_gemm_bias_kernel, apply_tanh=apply_tanh)
    return pl.pallas_call(
        kern,
        out_shape=jax.ShapeDtypeStruct((m, n), out_dtype),
        grid=(m // tm,),
        in_specs=[
            pl.BlockSpec((tm, k), lambda i: (i, 0)),
            pl.BlockSpec((k, n), lambda i: (0, 0)),     # resident weights
            pl.BlockSpec((1, n), lambda i: (0, 0)),     # resident bias
        ],
        out_specs=pl.BlockSpec((tm, n), lambda i: (i, 0)),
        compiler_params=pltpu.CompilerParams(
            dimension_semantics=("parallel",),
            vmem_limit_bytes=_VMEM_LIMIT),
        cost_estimate=cost,
    )(a, w, bias_row)


def pallas_fused_linear(x, w1, b1, w2, b2):
    """decoder_lin (Linear->Linear) fused into one pallas_call."""
    m, e = x.shape
    h = w1.shape[1]
    n = w2.shape[1]
    tm = _row_tile(m)
    return pl.pallas_call(
        _fused_linear_kernel,
        out_shape=jax.ShapeDtypeStruct((m, n), jnp.float32),
        grid=(m // tm,),
        in_specs=[
            pl.BlockSpec((tm, e), lambda i: (i, 0)),
            pl.BlockSpec((e, h), lambda i: (0, 0)),
            pl.BlockSpec((1, h), lambda i: (0, 0)),
            pl.BlockSpec((h, n), lambda i: (0, 0)),
            pl.BlockSpec((1, n), lambda i: (0, 0)),
        ],
        out_specs=pl.BlockSpec((tm, n), lambda i: (i, 0)),
        compiler_params=pltpu.CompilerParams(
            dimension_semantics=("parallel",),
            vmem_limit_bytes=_VMEM_LIMIT),
    )(x, w1, b1, w2, b2)


def pallas_batchnorm_tanh(x_nhwc, gamma, beta, *, eps=1e-5,
                          out_dtype=jnp.bfloat16):
    """Training-mode BatchNorm2d (batch stats, biased var) + tanh.

    Two tiled Pallas passes over the activation viewed as (N*H, W*C) so loads
    and stores stay lane-dense; the tiny (W*C,)->(C,) reduction and the
    scale/shift computation are XLA glue on vectors of length <= a few hundred.
    """
    n, h, w, c = x_nhwc.shape
    r, l = n * h, w * c
    x2d = x_nhwc.reshape(r, l)
    tr = _row_tile(r)
    grid = (r // tr,)

    sums, ssqs = pl.pallas_call(
        _bn_stats_kernel,
        out_shape=(jax.ShapeDtypeStruct((1, l), jnp.float32),
                   jax.ShapeDtypeStruct((1, l), jnp.float32)),
        grid=grid,
        in_specs=[pl.BlockSpec((tr, l), lambda i: (i, 0))],
        out_specs=(pl.BlockSpec((1, l), lambda i: (0, 0)),
                   pl.BlockSpec((1, l), lambda i: (0, 0))),
        compiler_params=pltpu.CompilerParams(
            dimension_semantics=("arbitrary",),
            vmem_limit_bytes=_VMEM_LIMIT),
    )(x2d)

    cnt = float(n * h * w)
    s = sums.reshape(w, c).sum(axis=0)
    ss = ssqs.reshape(w, c).sum(axis=0)
    mean = s / cnt
    var = jnp.maximum(ss / cnt - mean * mean, 0.0)
    inv = jax.lax.rsqrt(var + eps)
    scale = gamma * inv
    shift = beta - mean * scale
    scale_row = jnp.tile(scale, w).reshape(1, l)
    shift_row = jnp.tile(shift, w).reshape(1, l)

    y2d = pl.pallas_call(
        _bn_apply_kernel,
        out_shape=jax.ShapeDtypeStruct((r, l), out_dtype),
        grid=grid,
        in_specs=[pl.BlockSpec((tr, l), lambda i: (i, 0)),
                  pl.BlockSpec((1, l), lambda i: (0, 0)),
                  pl.BlockSpec((1, l), lambda i: (0, 0))],
        out_specs=pl.BlockSpec((tr, l), lambda i: (i, 0)),
        compiler_params=pltpu.CompilerParams(
            dimension_semantics=("parallel",),
            vmem_limit_bytes=_VMEM_LIMIT),
    )(x2d, scale_row, shift_row)
    return y2d.reshape(n, h, w, c)


# ----------------------------------------------------------------------------
# ConvTranspose2d(k=4, s=2, p=0) as ONE sub-pixel banded GEMM per layer
# ----------------------------------------------------------------------------
def _subpixel_weight(wt, wq):
    """Fold a (Cin, Cout, 4, 4) ConvTranspose2d weight into a banded GEMM
    weight of shape (2*Wp*Cin, 4*Wq*Cout).

    Rows:    (a, w, ci)  -- a = H-stencil tap (input rows q+1 / q), w = padded
                            input column, ci = input channel.
    Columns: (phase, r, co) with phase = 2*p_h + p_w, r = phase output column.
    """
    cin, cout, kh, kw = wt.shape
    assert (kh, kw) == (4, 4)
    wp = wq + 1
    w_idx = jnp.arange(wp)[:, None]
    r_idx = jnp.arange(wq)[None, :]
    phase_mats = []
    for ph in (0, 1):
        for pw in (0, 1):
            a_blocks = []
            for a in (0, 1):
                m = jnp.zeros((wp, cin, wq, cout), jnp.float32)
                for b in (0, 1):
                    tap = wt[:, :, ph + 2 * a, pw + 2 * b]          # (Cin, Cout)
                    sel = (w_idx == (r_idx + 1 - b)).astype(jnp.float32)
                    m = m + sel[:, None, :, None] * tap[None, :, None, :]
                a_blocks.append(m)
            phase_mats.append(
                jnp.stack(a_blocks, axis=0).reshape(2 * wp * cin, wq * cout))
    return jnp.concatenate(phase_mats, axis=1)


def conv_transpose_subpixel(x_nhwc, w_gemm, bias_row, output_padding,
                            *, apply_tanh=False):
    """x: (N,H,W,Cin) bf16.  One lane-dense Pallas GEMM computes all four
    stride-2 output phases; the 2-row H-stencil is folded into the reduction
    axis (no zero-dilation, no 16x im2col)."""
    n, h, w, cin = x_nhwc.shape
    ho, wo, hq, wq = _ct_out_geometry(h, w, output_padding)
    wp = wq + 1
    cout = w_gemm.shape[1] // (4 * wq)

    # 1 leading zero row/col + trailing zero rows/cols up to (Hq, Wq)
    xpad = jnp.pad(x_nhwc, ((0, 0), (1, hq - h), (1, wq - w), (0, 0)))
    # 2-row stencil along H -> reduction axis;  rows of A are (n, q)
    a_mat = jnp.stack([xpad[:, 1:hq + 1], xpad[:, 0:hq]], axis=2)
    a_mat = a_mat.reshape(n * hq, 2 * wp * cin)

    out = pallas_gemm_bias(a_mat, w_gemm, bias_row, apply_tanh=apply_tanh)

    # un-interleave the four phases and crop to the true output size
    out = out.reshape(n, hq, 2, 2, wq, cout).transpose(0, 1, 2, 4, 3, 5)
    out = out.reshape(n, 2 * hq, 2 * wq, cout)[:, :ho, :wo, :]
    return out


# ----------------------------------------------------------------------------
# parameters (PyTorch layout) + one-time deploy preprocessing
# ----------------------------------------------------------------------------
def init_params(key, encoded_space_dim, jj, kk):
    ks = jax.random.split(key, 10)
    n = lambda k, shape, s=0.1: (s * jax.random.normal(k, shape)).astype(jnp.float32)
    return {
        # Linear weights stored as (in, out) (== PyTorch weight.T)
        "lin1_w": n(ks[0], (encoded_space_dim, 128)),
        "lin1_b": n(ks[1], (128,)),
        "lin2_w": n(ks[2], (128, CH3 * jj * kk)),
        "lin2_b": n(ks[3], (CH3 * jj * kk,)),
        # ConvTranspose2d weights in PyTorch layout (Cin, Cout, kh, kw)
        "dec1_w": n(ks[4], (CH3, CH2, 4, 4)),
        "dec1_b": n(ks[5], (CH2,)),
        "dec2_w": n(ks[6], (CH2, CH1, 4, 4)),
        "dec2_b": n(ks[7], (CH1,)),
        "dec3_w": n(ks[8], (CH1, 3, 4, 4)),
        "dec3_b": n(ks[9], (3,)),
        # BatchNorm affine params (PyTorch default: gamma=1, beta=0)
        "bn1_g": jnp.ones((CH2,), jnp.float32),
        "bn1_b": jnp.zeros((CH2,), jnp.float32),
        "bn2_g": jnp.ones((CH1,), jnp.float32),
        "bn2_b": jnp.zeros((CH1,), jnp.float32),
    }


def prepare_params(params, jj, kk):
    """One-time 'deploy' preprocessing hoisted out of the forward pass:
    banded sub-pixel GEMM weights (bf16), tiled bias rows, reshaped lin bias."""
    dp = {
        "lin1_w": params["lin1_w"],
        "lin1_b": params["lin1_b"].reshape(1, -1),
        "lin2_w": params["lin2_w"],
        "lin2_b": params["lin2_b"].reshape(1, -1),
        "bn1_g": params["bn1_g"], "bn1_b": params["bn1_b"],
        "bn2_g": params["bn2_g"], "bn2_b": params["bn2_b"],
    }
    h, w = jj, kk
    for name, op in (("dec1", (0, 0)), ("dec2", (1, 1)), ("dec3", (0, 0))):
        ho, wo, _, wq = _ct_out_geometry(h, w, op)
        dp[name + "_w"] = _subpixel_weight(params[name + "_w"], wq).astype(jnp.bfloat16)
        dp[name + "_b"] = jnp.tile(params[name + "_b"], 4 * wq).reshape(1, -1)
        h, w = ho, wo
    return dp


# ----------------------------------------------------------------------------
# decoder forward (matches the PyTorch module)
# ----------------------------------------------------------------------------
def decoder_forward(x, dp, jj, kk):
    n = x.shape[0]
    # decoder_lin: Linear -> Linear (single fused Pallas call)
    h = pallas_fused_linear(x, dp["lin1_w"], dp["lin1_b"],
                            dp["lin2_w"], dp["lin2_b"])
    # unflatten to (N, CH3, jj, kk), move to NHWC, bf16 operands for the MXU
    h = h.reshape(n, CH3, jj, kk).transpose(0, 2, 3, 1).astype(jnp.bfloat16)

    # dec1 -> batchnorm1 -> tanh
    h = conv_transpose_subpixel(h, dp["dec1_w"], dp["dec1_b"], (0, 0))
    h = pallas_batchnorm_tanh(h, dp["bn1_g"], dp["bn1_b"])          # bf16 out

    # dec2 -> batchnorm2 -> tanh   (output_padding = (1, 1))
    h = conv_transpose_subpixel(h, dp["dec2_w"], dp["dec2_b"], (1, 1))
    h = pallas_batchnorm_tanh(h, dp["bn2_g"], dp["bn2_b"])          # bf16 out

    # dec3 -> tanh (fused in the GEMM epilogue)
    h = conv_transpose_subpixel(h, dp["dec3_w"], dp["dec3_b"], (0, 0),
                                apply_tanh=True)
    return h.transpose(0, 3, 1, 2)      # back to NCHW, f32


# ----------------------------------------------------------------------------
# pure-jnp reference (zero-dilation + flipped-kernel matmul), f32
# ----------------------------------------------------------------------------
def _reference_decoder(x, params, jj, kk):
    n = x.shape[0]
    h = x @ params["lin1_w"] + params["lin1_b"]
    h = h @ params["lin2_w"] + params["lin2_b"]
    h = h.reshape(n, CH3, jj, kk).transpose(0, 2, 3, 1)

    def conv_t(xh, wt, bias, op):
        nn, hh, ww, cin = xh.shape
        _, cout, kh, kw = wt.shape
        sh = sw = 2
        oph, opw = op
        ho = (hh - 1) * sh + kh + oph
        wo = (ww - 1) * sw + kw + opw
        hd, wd = (hh - 1) * sh + 1, (ww - 1) * sw + 1
        xd = jnp.zeros((nn, hd, wd, cin), xh.dtype).at[:, ::sh, ::sw, :].set(xh)
        xp = jnp.pad(xd, ((0, 0), (kh - 1, kh - 1 + oph),
                          (kw - 1, kw - 1 + opw), (0, 0)))
        cols = []
        for i in range(kh):
            for j in range(kw):
                cols.append(xp[:, i:i + ho, j:j + wo, :])
        a = jnp.stack(cols, axis=3).reshape(nn * ho * wo, kh * kw * cin)
        wc = jnp.flip(wt, axis=(2, 3)).transpose(2, 3, 0, 1).reshape(kh * kw * cin, cout)
        return (a @ wc + bias).reshape(nn, ho, wo, cout)

    def bn_tanh(xh, g, b, eps=1e-5):
        m = xh.mean(axis=(0, 1, 2))
        v = ((xh - m) ** 2).mean(axis=(0, 1, 2))
        return jnp.tanh((xh - m) * jax.lax.rsqrt(v + eps) * g + b)

    h = bn_tanh(conv_t(h, params["dec1_w"], params["dec1_b"], (0, 0)),
                params["bn1_g"], params["bn1_b"])
    h = bn_tanh(conv_t(h, params["dec2_w"], params["dec2_b"], (1, 1)),
                params["bn2_g"], params["bn2_b"])
    h = jnp.tanh(conv_t(h, params["dec3_w"], params["dec3_b"], (0, 0)))
    return h.transpose(0, 3, 1, 2)


if __name__ == "__main__":
    encoded_space_dim, jj, kk = 32, 2, 2
    batch = 2

    key = jax.random.PRNGKey(0)
    k_x, k_p = jax.random.split(key)
    x = jax.random.normal(k_x, (batch, encoded_space_dim), dtype=jnp.float32)
    params = init_params(k_p, encoded_space_dim, jj, kk)

    # one-time deploy-layout weight preprocessing (hoisted out of the forward)
    dparams = prepare_params(params, jj, kk)

    fwd = jax.jit(functools.partial(decoder_forward, jj=jj, kk=kk))
    out = fwd(x, dparams)
    jax.block_until_ready(out)

    # (2-1)*2+4=6 -> (6-1)*2+4+1=15 -> (15-1)*2+4=32  => (N, 3, 32, 32)
    assert out.shape == (batch, 3, 32, 32), out.shape

    # numerical self-check against the pure-jnp reference (bf16 MXU tolerance)
    ref = _reference_decoder(x, params, jj, kk)
    err = float(jnp.max(jnp.abs(out.astype(jnp.float32) - ref)))
    assert err < 5e-2, err

    print("KERNEL_OK")
</pallas_src>

<mosaic_0001>
module attributes {stable_mosaic.version = 11 : i64} {
  func.func @_fused_linear_kernel(%arg0: i32, %arg1: memref<2x32xf32, #tpu.memory_space<vmem>>, %arg2: memref<32x128xf32, #tpu.memory_space<vmem>>, %arg3: memref<1x128xf32, #tpu.memory_space<vmem>>, %arg4: memref<128x256xf32, #tpu.memory_space<vmem>>, %arg5: memref<1x256xf32, #tpu.memory_space<vmem>>, %arg6: memref<2x256xf32, #tpu.memory_space<vmem>>) attributes {dimension_semantics = [#tpu.dimension_semantics<parallel>], iteration_bounds = array<i64: 1>, scalar_prefetch = 0 : i64, scratch_operands = 0 : i64, tpu.core_type = #tpu.core_type<tc>, window_params = [{transform_indices = @transform_0, window_bounds = array<i64: 2, 32>}, {pipeline_mode = #tpu.pipeline_mode<synchronous>, transform_indices = @transform_1, window_bounds = array<i64: 32, 128>}, {pipeline_mode = #tpu.pipeline_mode<synchronous>, transform_indices = @transform_2, window_bounds = array<i64: 1, 128>}, {pipeline_mode = #tpu.pipeline_mode<synchronous>, transform_indices = @transform_3, window_bounds = array<i64: 128, 256>}, {pipeline_mode = #tpu.pipeline_mode<synchronous>, transform_indices = @transform_4, window_bounds = array<i64: 1, 256>}, {transform_indices = @transform_5, window_bounds = array<i64: 2, 256>}]} {
    %c0 = arith.constant 0 : index
    %c0_0 = arith.constant 0 : index
    %0 = vector.load %arg1[%c0, %c0_0] : memref<2x32xf32, #tpu.memory_space<vmem>>, vector<2x32xf32>
    %c0_1 = arith.constant 0 : index
    %c0_2 = arith.constant 0 : index
    %1 = vector.load %arg2[%c0_1, %c0_2] : memref<32x128xf32, #tpu.memory_space<vmem>>, vector<32x128xf32>
    %cst = arith.constant dense<0.000000e+00> : vector<2x128xf32>
    %2 = tpu.matmul %0, %1, %cst {dimension_numbers = #tpu.dot_dimension_numbers<[1], [0], [0], [1], [0, 0, 1, 1], [], []>} : vector<2x32xf32>, vector<32x128xf32>, vector<2x128xf32> -> vector<2x128xf32>
    %c0_3 = arith.constant 0 : index
    %c0_4 = arith.constant 0 : index
    %3 = vector.load %arg3[%c0_3, %c0_4] : memref<1x128xf32, #tpu.memory_space<vmem>>, vector<1x128xf32>
    %4 = vector.broadcast %3 : vector<1x128xf32> to vector<2x128xf32>
    %5 = arith.addf %2, %4 : vector<2x128xf32>
    %c0_5 = arith.constant 0 : index
    %c0_6 = arith.constant 0 : index
    %6 = vector.load %arg4[%c0_5, %c0_6] : memref<128x256xf32, #tpu.memory_space<vmem>>, vector<128x256xf32>
    %cst_7 = arith.constant dense<0.000000e+00> : vector<2x256xf32>
    %7 = tpu.matmul %5, %6, %cst_7 {dimension_numbers = #tpu.dot_dimension_numbers<[1], [0], [0], [1], [0, 0, 1, 1], [], []>} : vector<2x128xf32>, vector<128x256xf32>, vector<2x256xf32> -> vector<2x256xf32>
    %c0_8 = arith.constant 0 : index
    %c0_9 = arith.constant 0 : index
    %8 = vector.load %arg5[%c0_8, %c0_9] : memref<1x256xf32, #tpu.memory_space<vmem>>, vector<1x256xf32>
    %9 = vector.broadcast %8 : vector<1x256xf32> to vector<2x256xf32>
    %10 = arith.addf %7, %9 : vector<2x256xf32>
    %c0_10 = arith.constant 0 : index
    %c0_11 = arith.constant 0 : index
    %11 = vector.load %arg6[%c0_10, %c0_11] : memref<2x256xf32, #tpu.memory_space<vmem>>, vector<2x256xf32>
    tpu.vector_store %arg6[%c0_10, %c0_11], %10 {strides = array<i32>} : memref<2x256xf32, #tpu.memory_space<vmem>>, vector<2x256xf32>,
    return
  }
  func.func @transform_0(%arg0: i32) -> (i32, i32) {
    %c0_i32 = arith.constant 0 : i32
    %c0_i32_0 = arith.constant 0 : i32
    return %arg0, %c0_i32 : i32, i32
  }
  func.func @transform_1(%arg0: i32) -> (i32, i32) {
    %c0_i32 = arith.constant 0 : i32
    %c0_i32_0 = arith.constant 0 : i32
    %c0_i32_1 = arith.constant 0 : i32
    return %c0_i32, %c0_i32_0 : i32, i32
  }
  func.func @transform_2(%arg0: i32) -> (i32, i32) {
    %c0_i32 = arith.constant 0 : i32
    %c0_i32_0 = arith.constant 0 : i32
    %c0_i32_1 = arith.constant 0 : i32
    return %c0_i32, %c0_i32_0 : i32, i32
  }
  func.func @transform_3(%arg0: i32) -> (i32, i32) {
    %c0_i32 = arith.constant 0 : i32
    %c0_i32_0 = arith.constant 0 : i32
    %c0_i32_1 = arith.constant 0 : i32
    return %c0_i32, %c0_i32_0 : i32, i32
  }
  func.func @transform_4(%arg0: i32) -> (i32, i32) {
    %c0_i32 = arith.constant 0 : i32
    %c0_i32_0 = arith.constant 0 : i32
    %c0_i32_1 = arith.constant 0 : i32
    return %c0_i32, %c0_i32_0 : i32, i32
  }
  func.func @transform_5(%arg0: i32) -> (i32, i32) {
    %c0_i32 = arith.constant 0 : i32
    %c0_i32_0 = arith.constant 0 : i32
    return %arg0, %c0_i32 : i32, i32
  }
}

module attributes {stable_mosaic.version = 11 : i64} {
  func.func @_gemm_bias_kernel(%arg0: i32, %arg1: memref<6x512xbf16, #tpu.memory_space<vmem>>, %arg2: memref<512x384xbf16, #tpu.memory_space<vmem>>, %arg3: memref<1x384xf32, #tpu.memory_space<vmem>>, %arg4: memref<6x384xf32, #tpu.memory_space<vmem>>) attributes {dimension_semantics = [#tpu.dimension_semantics<parallel>], iteration_bounds = array<i64: 1>, scalar_prefetch = 0 : i64, scratch_operands = 0 : i64, tpu.core_type = #tpu.core_type<tc>, window_params = [{transform_indices = @transform_0, window_bounds = array<i64: 6, 512>}, {pipeline_mode = #tpu.pipeline_mode<synchronous>, transform_indices = @transform_1, window_bounds = array<i64: 512, 384>}, {pipeline_mode = #tpu.pipeline_mode<synchronous>, transform_indices = @transform_2, window_bounds = array<i64: 1, 384>}, {transform_indices = @transform_3, window_bounds = array<i64: 6, 384>}]} {
    %c0 = arith.constant 0 : index
    %c0_0 = arith.constant 0 : index
    %0 = vector.load %arg1[%c0, %c0_0] : memref<6x512xbf16, #tpu.memory_space<vmem>>, vector<6x512xbf16>
    %c0_1 = arith.constant 0 : index
    %c0_2 = arith.constant 0 : index
    %1 = vector.load %arg2[%c0_1, %c0_2] : memref<512x384xbf16, #tpu.memory_space<vmem>>, vector<512x384xbf16>
    %cst = arith.constant dense<0.000000e+00> : vector<6x384xf32>
    %2 = tpu.matmul %0, %1, %cst {dimension_numbers = #tpu.dot_dimension_numbers<[1], [0], [0], [1], [0, 0, 1, 1], [], []>} : vector<6x512xbf16>, vector<512x384xbf16>, vector<6x384xf32> -> vector<6x384xf32>
    %c0_3 = arith.constant 0 : index
    %c0_4 = arith.constant 0 : index
    %3 = vector.load %arg3[%c0_3, %c0_4] : memref<1x384xf32, #tpu.memory_space<vmem>>, vector<1x384xf32>
    %4 = vector.broadcast %3 : vector<1x384xf32> to vector<6x384xf32>
    %5 = arith.addf %2, %4 : vector<6x384xf32>
    %c0_5 = arith.constant 0 : index
    %c0_6 = arith.constant 0 : index
    %6 = vector.load %arg4[%c0_5, %c0_6] : memref<6x384xf32, #tpu.memory_space<vmem>>, vector<6x384xf32>
    tpu.vector_store %arg4[%c0_5, %c0_6], %5 {strides = array<i32>} : memref<6x384xf32, #tpu.memory_space<vmem>>, vector<6x384xf32>,
    return
  }
  func.func @transform_0(%arg0: i32) -> (i32, i32) {
    %c0_i32 = arith.constant 0 : i32
    %c0_i32_0 = arith.constant 0 : i32
    return %arg0, %c0_i32 : i32, i32
  }
  func.func @transform_1(%arg0: i32) -> (i32, i32) {
    %c0_i32 = arith.constant 0 : i32
    %c0_i32_0 = arith.constant 0 : i32
    %c0_i32_1 = arith.constant 0 : i32
    return %c0_i32, %c0_i32_0 : i32, i32
  }
  func.func @transform_2(%arg0: i32) -> (i32, i32) {
    %c0_i32 = arith.constant 0 : i32
    %c0_i32_0 = arith.constant 0 : i32
    %c0_i32_1 = arith.constant 0 : i32
    return %c0_i32, %c0_i32_0 : i32, i32
  }
  func.func @transform_3(%arg0: i32) -> (i32, i32) {
    %c0_i32 = arith.constant 0 : i32
    %c0_i32_0 = arith.constant 0 : i32
    return %arg0, %c0_i32 : i32, i32
  }
}

module attributes {stable_mosaic.version = 11 : i64} {
  func.func @_bn_stats_kernel(%arg0: i32, %arg1: memref<12x192xf32, #tpu.memory_space<vmem>>, %arg2: memref<1x192xf32, #tpu.memory_space<vmem>>, %arg3: memref<1x192xf32, #tpu.memory_space<vmem>>) attributes {dimension_semantics = [#tpu.dimension_semantics<arbitrary>], iteration_bounds = array<i64: 1>, scalar_prefetch = 0 : i64, scratch_operands = 0 : i64, tpu.core_type = #tpu.core_type<tc>, window_params = [{transform_indices = @transform_0, window_bounds = array<i64: 12, 192>}, {pipeline_mode = #tpu.pipeline_mode<synchronous>, transform_indices = @transform_1, window_bounds = array<i64: 1, 192>}, {pipeline_mode = #tpu.pipeline_mode<synchronous>, transform_indices = @transform_2, window_bounds = array<i64: 1, 192>}]} {
    %c0_i32 = arith.constant 0 : i32
    %0 = arith.cmpi eq, %arg0, %c0_i32 : i32
    %1 = arith.extui %0 : i1 to i32
    %c0_i32_0 = arith.constant 0 : i32
    %2 = arith.cmpi ne, %1, %c0_i32_0 : i32
    scf.if %2 {
      %cst_11 = arith.constant 0.000000e+00 : f32
      %15 = vector.broadcast %cst_11 : f32 to vector<1x192xf32>
      %c0_12 = arith.constant 0 : index
      %c0_13 = arith.constant 0 : index
      %16 = vector.load %arg2[%c0_12, %c0_13] : memref<1x192xf32, #tpu.memory_space<vmem>>, vector<1x192xf32>
      tpu.vector_store %arg2[%c0_12, %c0_13], %15 {strides = array<i32>} : memref<1x192xf32, #tpu.memory_space<vmem>>, vector<1x192xf32>,
      %cst_14 = arith.constant 0.000000e+00 : f32
      %17 = vector.broadcast %cst_14 : f32 to vector<1x192xf32>
      %c0_15 = arith.constant 0 : index
      %c0_16 = arith.constant 0 : index
      %18 = vector.load %arg3[%c0_15, %c0_16] : memref<1x192xf32, #tpu.memory_space<vmem>>, vector<1x192xf32>
      tpu.vector_store %arg3[%c0_15, %c0_16], %17 {strides = array<i32>} : memref<1x192xf32, #tpu.memory_space<vmem>>, vector<1x192xf32>,
    } else {
    }
    %c0 = arith.constant 0 : index
    %c0_1 = arith.constant 0 : index
    %3 = vector.load %arg1[%c0, %c0_1] : memref<12x192xf32, #tpu.memory_space<vmem>>, vector<12x192xf32>
    %c0_2 = arith.constant 0 : index
    %c0_3 = arith.constant 0 : index
    %4 = vector.load %arg2[%c0_2, %c0_3] : memref<1x192xf32, #tpu.memory_space<vmem>>, vector<1x192xf32>
    %cst = arith.constant dense<0.000000e+00> : vector<192xf32>
    %5 = vector.multi_reduction <add>, %3, %cst [0] : vector<12x192xf32> to vector<192xf32>
    %6 = vector.shape_cast %5 : vector<192xf32> to vector<1x192xf32>
    %7 = arith.addf %4, %6 : vector<1x192xf32>
    %c0_4 = arith.constant 0 : index
    %c0_5 = arith.constant 0 : index
    %8 = vector.load %arg2[%c0_4, %c0_5] : memref<1x192xf32, #tpu.memory_space<vmem>>, vector<1x192xf32>
    tpu.vector_store %arg2[%c0_4, %c0_5], %7 {strides = array<i32>} : memref<1x192xf32, #tpu.memory_space<vmem>>, vector<1x192xf32>,
    %c0_6 = arith.constant 0 : index
    %c0_7 = arith.constant 0 : index
    %9 = vector.load %arg3[%c0_6, %c0_7] : memref<1x192xf32, #tpu.memory_space<vmem>>, vector<1x192xf32>
    %10 = arith.mulf %3, %3 : vector<12x192xf32>
    %cst_8 = arith.constant dense<0.000000e+00> : vector<192xf32>
    %11 = vector.multi_reduction <add>, %10, %cst_8 [0] : vector<12x192xf32> to vector<192xf32>
    %12 = vector.shape_cast %11 : vector<192xf32> to vector<1x192xf32>
    %13 = arith.addf %9, %12 : vector<1x192xf32>
    %c0_9 = arith.constant 0 : index
    %c0_10 = arith.constant 0 : index
    %14 = vector.load %arg3[%c0_9, %c0_10] : memref<1x192xf32, #tpu.memory_space<vmem>>, vector<1x192xf32>
    tpu.vector_store %arg3[%c0_9, %c0_10], %13 {strides = array<i32>} : memref<1x192xf32, #tpu.memory_space<vmem>>, vector<1x192xf32>,
    return
  }
  func.func @transform_0(%arg0: i32) -> (i32, i32) {
    %c0_i32 = arith.constant 0 : i32
    %c0_i32_0 = arith.constant 0 : i32
    return %arg0, %c0_i32 : i32, i32
  }
  func.func @transform_1(%arg0: i32) -> (i32, i32) {
    %c0_i32 = arith.constant 0 : i32
    %c0_i32_0 = arith.constant 0 : i32
    %c0_i32_1 = arith.constant 0 : i32
    return %c0_i32, %c0_i32_0 : i32, i32
  }
  func.func @transform_2(%arg0: i32) -> (i32, i32) {
    %c0_i32 = arith.constant 0 : i32
    %c0_i32_0 = arith.constant 0 : i32
    %c0_i32_1 = arith.constant 0 : i32
    return %c0_i32, %c0_i32_0 : i32, i32
  }
}

module attributes {stable_mosaic.version = 11 : i64} {
  func.func @_bn_apply_kernel(%arg0: i32, %arg1: memref<12x192xf32, #tpu.memory_space<vmem>>, %arg2: memref<1x192xf32, #tpu.memory_space<vmem>>, %arg3: memref<1x192xf32, #tpu.memory_space<vmem>>, %arg4: memref<12x192xbf16, #tpu.memory_space<vmem>>) attributes {dimension_semantics = [#tpu.dimension_semantics<parallel>], iteration_bounds = array<i64: 1>, scalar_prefetch = 0 : i64, scratch_operands = 0 : i64, tpu.core_type = #tpu.core_type<tc>, window_params = [{transform_indices = @transform_0, window_bounds = array<i64: 12, 192>}, {pipeline_mode = #tpu.pipeline_mode<synchronous>, transform_indices = @transform_1, window_bounds = array<i64: 1, 192>}, {pipeline_mode = #tpu.pipeline_mode<synchronous>, transform_indices = @transform_2, window_bounds = array<i64: 1, 192>}, {transform_indices = @transform_3, window_bounds = array<i64: 12, 192>}]} {
    %c0 = arith.constant 0 : index
    %c0_0 = arith.constant 0 : index
    %0 = vector.load %arg1[%c0, %c0_0] : memref<12x192xf32, #tpu.memory_space<vmem>>, vector<12x192xf32>
    %c0_1 = arith.constant 0 : index
    %c0_2 = arith.constant 0 : index
    %1 = vector.load %arg2[%c0_1, %c0_2] : memref<1x192xf32, #tpu.memory_space<vmem>>, vector<1x192xf32>
    %2 = vector.broadcast %1 : vector<1x192xf32> to vector<12x192xf32>
    %3 = arith.mulf %0, %2 : vector<12x192xf32>
    %c0_3 = arith.constant 0 : index
    %c0_4 = arith.constant 0 : index
    %4 = vector.load %arg3[%c0_3, %c0_4] : memref<1x192xf32, #tpu.memory_space<vmem>>, vector<1x192xf32>
    %5 = vector.broadcast %4 : vector<1x192xf32> to vector<12x192xf32>
    %6 = arith.addf %3, %5 : vector<12x192xf32>
    %7 = math.tanh %6 : vector<12x192xf32>
    %8 = arith.truncf %7 : vector<12x192xf32> to vector<12x192xbf16>
    %c0_5 = arith.constant 0 : index
    %c0_6 = arith.constant 0 : index
    %9 = vector.load %arg4[%c0_5, %c0_6] : memref<12x192xbf16, #tpu.memory_space<vmem>>, vector<12x192xbf16>
    tpu.vector_store %arg4[%c0_5, %c0_6], %8 {strides = array<i32>} : memref<12x192xbf16, #tpu.memory_space<vmem>>, vector<12x192xbf16>,
    return
  }
  func.func @transform_0(%arg0: i32) -> (i32, i32) {
    %c0_i32 = arith.constant 0 : i32
    %c0_i32_0 = arith.constant 0 : i32
    return %arg0, %c0_i32 : i32, i32
  }
  func.func @transform_1(%arg0: i32) -> (i32, i32) {
    %c0_i32 = arith.constant 0 : i32
    %c0_i32_0 = arith.constant 0 : i32
    %c0_i32_1 = arith.constant 0 : i32
    return %c0_i32, %c0_i32_0 : i32, i32
  }
  func.func @transform_2(%arg0: i32) -> (i32, i32) {
    %c0_i32 = arith.constant 0 : i32
    %c0_i32_0 = arith.constant 0 : i32
    %c0_i32_1 = arith.constant 0 : i32
    return %c0_i32, %c0_i32_0 : i32, i32
  }
  func.func @transform_3(%arg0: i32) -> (i32, i32) {
    %c0_i32 = arith.constant 0 : i32
    %c0_i32_0 = arith.constant 0 : i32
    return %arg0, %c0_i32 : i32, i32
  }
}

module attributes {stable_mosaic.version = 11 : i64} {
  func.func @_gemm_bias_kernel(%arg0: i32, %arg1: memref<16x576xbf16, #tpu.memory_space<vmem>>, %arg2: memref<576x512xbf16, #tpu.memory_space<vmem>>, %arg3: memref<1x512xf32, #tpu.memory_space<vmem>>, %arg4: memref<16x512xf32, #tpu.memory_space<vmem>>) attributes {dimension_semantics = [#tpu.dimension_semantics<parallel>], iteration_bounds = array<i64: 1>, scalar_prefetch = 0 : i64, scratch_operands = 0 : i64, tpu.core_type = #tpu.core_type<tc>, window_params = [{transform_indices = @transform_0, window_bounds = array<i64: 16, 576>}, {pipeline_mode = #tpu.pipeline_mode<synchronous>, transform_indices = @transform_1, window_bounds = array<i64: 576, 512>}, {pipeline_mode = #tpu.pipeline_mode<synchronous>, transform_indices = @transform_2, window_bounds = array<i64: 1, 512>}, {transform_indices = @transform_3, window_bounds = array<i64: 16, 512>}]} {
    %c0 = arith.constant 0 : index
    %c0_0 = arith.constant 0 : index
    %0 = vector.load %arg1[%c0, %c0_0] : memref<16x576xbf16, #tpu.memory_space<vmem>>, vector<16x576xbf16>
    %c0_1 = arith.constant 0 : index
    %c0_2 = arith.constant 0 : index
    %1 = vector.load %arg2[%c0_1, %c0_2] : memref<576x512xbf16, #tpu.memory_space<vmem>>, vector<576x512xbf16>
    %cst = arith.constant dense<0.000000e+00> : vector<16x512xf32>
    %2 = tpu.matmul %0, %1, %cst {dimension_numbers = #tpu.dot_dimension_numbers<[1], [0], [0], [1], [0, 0, 1, 1], [], []>} : vector<16x576xbf16>, vector<576x512xbf16>, vector<16x512xf32> -> vector<16x512xf32>
    %c0_3 = arith.constant 0 : index
    %c0_4 = arith.constant 0 : index
    %3 = vector.load %arg3[%c0_3, %c0_4] : memref<1x512xf32, #tpu.memory_space<vmem>>, vector<1x512xf32>
    %4 = vector.broadcast %3 : vector<1x512xf32> to vector<16x512xf32>
    %5 = arith.addf %2, %4 : vector<16x512xf32>
    %c0_5 = arith.constant 0 : index
    %c0_6 = arith.constant 0 : index
    %6 = vector.load %arg4[%c0_5, %c0_6] : memref<16x512xf32, #tpu.memory_space<vmem>>, vector<16x512xf32>
    tpu.vector_store %arg4[%c0_5, %c0_6], %5 {strides = array<i32>} : memref<16x512xf32, #tpu.memory_space<vmem>>, vector<16x512xf32>,
    return
  }
  func.func @transform_0(%arg0: i32) -> (i32, i32) {
    %c0_i32 = arith.constant 0 : i32
    %c0_i32_0 = arith.constant 0 : i32
    return %arg0, %c0_i32 : i32, i32
  }
  func.func @transform_1(%arg0: i32) -> (i32, i32) {
    %c0_i32 = arith.constant 0 : i32
    %c0_i32_0 = arith.constant 0 : i32
    %c0_i32_1 = arith.constant 0 : i32
    return %c0_i32, %c0_i32_0 : i32, i32
  }
  func.func @transform_2(%arg0: i32) -> (i32, i32) {
    %c0_i32 = arith.constant 0 : i32
    %c0_i32_0 = arith.constant 0 : i32
    %c0_i32_1 = arith.constant 0 : i32
    return %c0_i32, %c0_i32_0 : i32, i32
  }
  func.func @transform_3(%arg0: i32) -> (i32, i32) {
    %c0_i32 = arith.constant 0 : i32
    %c0_i32_0 = arith.constant 0 : i32
    return %arg0, %c0_i32 : i32, i32
  }
}

module attributes {stable_mosaic.version = 11 : i64} {
  func.func @_bn_stats_kernel(%arg0: i32, %arg1: memref<30x240xf32, #tpu.memory_space<vmem>>, %arg2: memref<1x240xf32, #tpu.memory_space<vmem>>, %arg3: memref<1x240xf32, #tpu.memory_space<vmem>>) attributes {dimension_semantics = [#tpu.dimension_semantics<arbitrary>], iteration_bounds = array<i64: 1>, scalar_prefetch = 0 : i64, scratch_operands = 0 : i64, tpu.core_type = #tpu.core_type<tc>, window_params = [{transform_indices = @transform_0, window_bounds = array<i64: 30, 240>}, {pipeline_mode = #tpu.pipeline_mode<synchronous>, transform_indices = @transform_1, window_bounds = array<i64: 1, 240>}, {pipeline_mode = #tpu.pipeline_mode<synchronous>, transform_indices = @transform_2, window_bounds = array<i64: 1, 240>}]} {
    %c0_i32 = arith.constant 0 : i32
    %0 = arith.cmpi eq, %arg0, %c0_i32 : i32
    %1 = arith.extui %0 : i1 to i32
    %c0_i32_0 = arith.constant 0 : i32
    %2 = arith.cmpi ne, %1, %c0_i32_0 : i32
    scf.if %2 {
      %cst_11 = arith.constant 0.000000e+00 : f32
      %15 = vector.broadcast %cst_11 : f32 to vector<1x240xf32>
      %c0_12 = arith.constant 0 : index
      %c0_13 = arith.constant 0 : index
      %16 = vector.load %arg2[%c0_12, %c0_13] : memref<1x240xf32, #tpu.memory_space<vmem>>, vector<1x240xf32>
      tpu.vector_store %arg2[%c0_12, %c0_13], %15 {strides = array<i32>} : memref<1x240xf32, #tpu.memory_space<vmem>>, vector<1x240xf32>,
      %cst_14 = arith.constant 0.000000e+00 : f32
      %17 = vector.broadcast %cst_14 : f32 to vector<1x240xf32>
      %c0_15 = arith.constant 0 : index
      %c0_16 = arith.constant 0 : index
      %18 = vector.load %arg3[%c0_15, %c0_16] : memref<1x240xf32, #tpu.memory_space<vmem>>, vector<1x240xf32>
      tpu.vector_store %arg3[%c0_15, %c0_16], %17 {strides = array<i32>} : memref<1x240xf32, #tpu.memory_space<vmem>>, vector<1x240xf32>,
    } else {
    }
    %c0 = arith.constant 0 : index
    %c0_1 = arith.constant 0 : index
    %3 = vector.load %arg1[%c0, %c0_1] : memref<30x240xf32, #tpu.memory_space<vmem>>, vector<30x240xf32>
    %c0_2 = arith.constant 0 : index
    %c0_3 = arith.constant 0 : index
    %4 = vector.load %arg2[%c0_2, %c0_3] : memref<1x240xf32, #tpu.memory_space<vmem>>, vector<1x240xf32>
    %cst = arith.constant dense<0.000000e+00> : vector<240xf32>
    %5 = vector.multi_reduction <add>, %3, %cst [0] : vector<30x240xf32> to vector<240xf32>
    %6 = vector.shape_cast %5 : vector<240xf32> to vector<1x240xf32>
    %7 = arith.addf %4, %6 : vector<1x240xf32>
    %c0_4 = arith.constant 0 : index
    %c0_5 = arith.constant 0 : index
    %8 = vector.load %arg2[%c0_4, %c0_5] : memref<1x240xf32, #tpu.memory_space<vmem>>, vector<1x240xf32>
    tpu.vector_store %arg2[%c0_4, %c0_5], %7 {strides = array<i32>} : memref<1x240xf32, #tpu.memory_space<vmem>>, vector<1x240xf32>,
    %c0_6 = arith.constant 0 : index
    %c0_7 = arith.constant 0 : index
    %9 = vector.load %arg3[%c0_6, %c0_7] : memref<1x240xf32, #tpu.memory_space<vmem>>, vector<1x240xf32>
    %10 = arith.mulf %3, %3 : vector<30x240xf32>
    %cst_8 = arith.constant dense<0.000000e+00> : vector<240xf32>
    %11 = vector.multi_reduction <add>, %10, %cst_8 [0] : vector<30x240xf32> to vector<240xf32>
    %12 = vector.shape_cast %11 : vector<240xf32> to vector<1x240xf32>
    %13 = arith.addf %9, %12 : vector<1x240xf32>
    %c0_9 = arith.constant 0 : index
    %c0_10 = arith.constant 0 : index
    %14 = vector.load %arg3[%c0_9, %c0_10] : memref<1x240xf32, #tpu.memory_space<vmem>>, vector<1x240xf32>
    tpu.vector_store %arg3[%c0_9, %c0_10], %13 {strides = array<i32>} : memref<1x240xf32, #tpu.memory_space<vmem>>, vector<1x240xf32>,
    return
  }
  func.func @transform_0(%arg0: i32) -> (i32, i32) {
    %c0_i32 = arith.constant 0 : i32
    %c0_i32_0 = arith.constant 0 : i32
    return %arg0, %c0_i32 : i32, i32
  }
  func.func @transform_1(%arg0: i32) -> (i32, i32) {
    %c0_i32 = arith.constant 0 : i32
    %c0_i32_0 = arith.constant 0 : i32
    %c0_i32_1 = arith.constant 0 : i32
    return %c0_i32, %c0_i32_0 : i32, i32
  }
  func.func @transform_2(%arg0: i32) -> (i32, i32) {
    %c0_i32 = arith.constant 0 : i32
    %c0_i32_0 = arith.constant 0 : i32
    %c0_i32_1 = arith.constant 0 : i32
    return %c0_i32, %c0_i32_0 : i32, i32
  }
}

module attributes {stable_mosaic.version = 11 : i64} {
  func.func @_bn_apply_kernel(%arg0: i32, %arg1: memref<30x240xf32, #tpu.memory_space<vmem>>, %arg2: memref<1x240xf32, #tpu.memory_space<vmem>>, %arg3: memref<1x240xf32, #tpu.memory_space<vmem>>, %arg4: memref<30x240xbf16, #tpu.memory_space<vmem>>) attributes {dimension_semantics = [#tpu.dimension_semantics<parallel>], iteration_bounds = array<i64: 1>, scalar_prefetch = 0 : i64, scratch_operands = 0 : i64, tpu.core_type = #tpu.core_type<tc>, window_params = [{transform_indices = @transform_0, window_bounds = array<i64: 30, 240>}, {pipeline_mode = #tpu.pipeline_mode<synchronous>, transform_indices = @transform_1, window_bounds = array<i64: 1, 240>}, {pipeline_mode = #tpu.pipeline_mode<synchronous>, transform_indices = @transform_2, window_bounds = array<i64: 1, 240>}, {transform_indices = @transform_3, window_bounds = array<i64: 30, 240>}]} {
    %c0 = arith.constant 0 : index
    %c0_0 = arith.constant 0 : index
    %0 = vector.load %arg1[%c0, %c0_0] : memref<30x240xf32, #tpu.memory_space<vmem>>, vector<30x240xf32>
    %c0_1 = arith.constant 0 : index
    %c0_2 = arith.constant 0 : index
    %1 = vector.load %arg2[%c0_1, %c0_2] : memref<1x240xf32, #tpu.memory_space<vmem>>, vector<1x240xf32>
    %2 = vector.broadcast %1 : vector<1x240xf32> to vector<30x240xf32>
    %3 = arith.mulf %0, %2 : vector<30x240xf32>
    %c0_3 = arith.constant 0 : index
    %c0_4 = arith.constant 0 : index
    %4 = vector.load %arg3[%c0_3, %c0_4] : memref<1x240xf32, #tpu.memory_space<vmem>>, vector<1x240xf32>
    %5 = vector.broadcast %4 : vector<1x240xf32> to vector<30x240xf32>
    %6 = arith.addf %3, %5 : vector<30x240xf32>
    %7 = math.tanh %6 : vector<30x240xf32>
    %8 = arith.truncf %7 : vector<30x240xf32> to vector<30x240xbf16>
    %c0_5 = arith.constant 0 : index
    %c0_6 = arith.constant 0 : index
    %9 = vector.load %arg4[%c0_5, %c0_6] : memref<30x240xbf16, #tpu.memory_space<vmem>>, vector<30x240xbf16>
    tpu.vector_store %arg4[%c0_5, %c0_6], %8 {strides = array<i32>} : memref<30x240xbf16, #tpu.memory_space<vmem>>, vector<30x240xbf16>,
    return
  }
  func.func @transform_0(%arg0: i32) -> (i32, i32) {
    %c0_i32 = arith.constant 0 : i32
    %c0_i32_0 = arith.constant 0 : i32
    return %arg0, %c0_i32 : i32, i32
  }
  func.func @transform_1(%arg0: i32) -> (i32, i32) {
    %c0_i32 = arith.constant 0 : i32
    %c0_i32_0 = arith.constant 0 : i32
    %c0_i32_1 = arith.constant 0 : i32
    return %c0_i32, %c0_i32_0 : i32, i32
  }
  func.func @transform_2(%arg0: i32) -> (i32, i32) {
    %c0_i32 = arith.constant 0 : i32
    %c0_i32_0 = arith.constant 0 : i32
    %c0_i32_1 = arith.constant 0 : i32
    return %c0_i32, %c0_i32_0 : i32, i32
  }
  func.func @transform_3(%arg0: i32) -> (i32, i32) {
    %c0_i32 = arith.constant 0 : i32
    %c0_i32_0 = arith.constant 0 : i32
    return %arg0, %c0_i32 : i32, i32
  }
}

module attributes {stable_mosaic.version = 11 : i64} {
  func.func @_gemm_bias_kernel(%arg0: i32, %arg1: memref<32x544xbf16, #tpu.memory_space<vmem>>, %arg2: memref<544x192xbf16, #tpu.memory_space<vmem>>, %arg3: memref<1x192xf32, #tpu.memory_space<vmem>>, %arg4: memref<32x192xf32, #tpu.memory_space<vmem>>) attributes {dimension_semantics = [#tpu.dimension_semantics<parallel>], iteration_bounds = array<i64: 1>, scalar_prefetch = 0 : i64, scratch_operands = 0 : i64, tpu.core_type = #tpu.core_type<tc>, window_params = [{transform_indices = @transform_0, window_bounds = array<i64: 32, 544>}, {pipeline_mode = #tpu.pipeline_mode<synchronous>, transform_indices = @transform_1, window_bounds = array<i64: 544, 192>}, {pipeline_mode = #tpu.pipeline_mode<synchronous>, transform_indices = @transform_2, window_bounds = array<i64: 1, 192>}, {transform_indices = @transform_3, window_bounds = array<i64: 32, 192>}]} {
    %c0 = arith.constant 0 : index
    %c0_0 = arith.constant 0 : index
    %0 = vector.load %arg1[%c0, %c0_0] : memref<32x544xbf16, #tpu.memory_space<vmem>>, vector<32x544xbf16>
    %c0_1 = arith.constant 0 : index
    %c0_2 = arith.constant 0 : index
    %1 = vector.load %arg2[%c0_1, %c0_2] : memref<544x192xbf16, #tpu.memory_space<vmem>>, vector<544x192xbf16>
    %cst = arith.constant dense<0.000000e+00> : vector<32x192xf32>
    %2 = tpu.matmul %0, %1, %cst {dimension_numbers = #tpu.dot_dimension_numbers<[1], [0], [0], [1], [0, 0, 1, 1], [], []>} : vector<32x544xbf16>, vector<544x192xbf16>, vector<32x192xf32> -> vector<32x192xf32>
    %c0_3 = arith.constant 0 : index
    %c0_4 = arith.constant 0 : index
    %3 = vector.load %arg3[%c0_3, %c0_4] : memref<1x192xf32, #tpu.memory_space<vmem>>, vector<1x192xf32>
    %4 = vector.broadcast %3 : vector<1x192xf32> to vector<32x192xf32>
    %5 = arith.addf %2, %4 : vector<32x192xf32>
    %6 = math.tanh %5 : vector<32x192xf32>
    %c0_5 = arith.constant 0 : index
    %c0_6 = arith.constant 0 : index
    %7 = vector.load %arg4[%c0_5, %c0_6] : memref<32x192xf32, #tpu.memory_space<vmem>>, vector<32x192xf32>
    tpu.vector_store %arg4[%c0_5, %c0_6], %6 {strides = array<i32>} : memref<32x192xf32, #tpu.memory_space<vmem>>, vector<32x192xf32>,
    return
  }
  func.func @transform_0(%arg0: i32) -> (i32, i32) {
    %c0_i32 = arith.constant 0 : i32
    %c0_i32_0 = arith.constant 0 : i32
    return %arg0, %c0_i32 : i32, i32
  }
  func.func @transform_1(%arg0: i32) -> (i32, i32) {
    %c0_i32 = arith.constant 0 : i32
    %c0_i32_0 = arith.constant 0 : i32
    %c0_i32_1 = arith.constant 0 : i32
    return %c0_i32, %c0_i32_0 : i32, i32
  }
  func.func @transform_2(%arg0: i32) -> (i32, i32) {
    %c0_i32 = arith.constant 0 : i32
    %c0_i32_0 = arith.constant 0 : i32
    %c0_i32_1 = arith.constant 0 : i32
    return %c0_i32, %c0_i32_0 : i32, i32
  }
  func.func @transform_3(%arg0: i32) -> (i32, i32) {
    %c0_i32 = arith.constant 0 : i32
    %c0_i32_0 = arith.constant 0 : i32
    return %arg0, %c0_i32 : i32, i32
  }
}

</mosaic_0001>

<bundles_post_ra>
// kernel: decoder_forward.8
= control target key start
LH: loop header
LB: loop body
LE: loop exit
PB: predicated region body
PF: predicated region fallthrough
CT: control target
= control target key end

     0   :  { %10 = vsyncpa [#allocation3], 0  ;;  %s592_s0 = inlined_call_operand.hbm [shape: f32[2,32], index: 0, kind: input, shape index: {}]   ;;  %s593_s1 = inlined_call_operand.hbm [shape: f32[32,128], index: 1, kind: input, shape index: {}]   ;;  %s594_s2 = inlined_call_operand.hbm [shape: f32[1,128], index: 2, kind: input, shape index: {}]   ;;  %s595_s3 = inlined_call_operand.hbm [shape: f32[128,256], index: 3, kind: input, shape index: {}]   ;;  %s596_s4 = inlined_call_operand.hbm [shape: f32[1,256], index: 4, kind: input, shape index: {}]   ;;  %s597_s5 = inlined_call_operand.vmem [shape: f32[2,256], index: 5, kind: output, shape index: {}]  }
   0x1   :  { %11 = vsyncpa [#allocation5], 0 }
   0x2   :  { %12 = vsyncpa [#allocation8], 0  ;;  %s487_s18 = smov [#allocation4]   ;;  %s371_s22 = scalar_lea.hbm %s593_s1, 512 }
   0x3   :  { %s28_s19 = sshll.u32 %s487_s18, 4  ;;  %p372_p0 = scmp.ne.s32.totalorder %s593_s1, %s371_s22  ;;  %s29_s19 = int_to_ptr.vmem [resolvable:$true] %s28_s19 }
   0x4   :  { %p375_p1 = scmp.lt.u32.totalorder %s371_s22, %s593_s1 }
   0x6   :  { %p377_p2 = pnand %p375_p1, %p372_p0 }
   0x8   :  { %380 = shalt.err (!%p377_p2)
}
   0x9   :  { %s381_s27 = scalar_lea.vmem %s29_s19, 512  ;;  %p386_p4 = scmp.lt.s32.totalorder %s29_s19, %s29_s19 }
   0xa   :  { %p382_p3 = scmp.ne.s32.totalorder %s29_s19, %s381_s27  ;;  %p387_p5 = scmp.lt.s32.totalorder %s381_s27, %s381_s27 }
   0xc   :  { %p388_p6 = por %p387_p5, %p386_p4 }
   0xe   :  { %p389_p7 = pnand %p388_p6, %p382_p3 }
  0x10   :  { %392 = shalt.err (!%p389_p7)
}
  0x11   :  { %s488_s28 = smov 128   ;;  %s489_s29 = smov 8  }
  0x12   :  { %34 = dma.hbm_to_vmem [thread:$0]  %s593_s1, 512, %s29_s19, [#allocation5], %s488_s28, %s488_s28, %s489_s29  }
  0x13   :  { %s490_s7 = smov [#allocation7]   ;;  %s393_s11 = scalar_lea.hbm %s595_s3, 4096 }
  0x14   :  { %s50_s8 = sshll.u32 %s490_s7, 4  ;;  %p394_p8 = scmp.ne.s32.totalorder %s595_s3, %s393_s11  ;;  %s51_s8 = int_to_ptr.vmem [resolvable:$true] %s50_s8 }
  0x15   :  { %p397_p9 = scmp.lt.u32.totalorder %s393_s11, %s595_s3 }
  0x17   :  { %p399_p10 = pnand %p397_p9, %p394_p8 }
  0x19   :  { %402 = shalt.err (!%p399_p10)
}
  0x1a   :  { %s403_s16 = scalar_lea.vmem %s51_s8, 4096  ;;  %p408_p12 = scmp.lt.s32.totalorder %s51_s8, %s51_s8 }
  0x1b   :  { %p404_p11 = scmp.ne.s32.totalorder %s51_s8, %s403_s16  ;;  %p409_p13 = scmp.lt.s32.totalorder %s403_s16, %s403_s16 }
  0x1d   :  { %p410_p0 = por %p409_p13, %p408_p12 }
  0x1f   :  { %p411_p1 = pnand %p410_p0, %p404_p11 }
  0x21   :  { %414 = shalt.err (!%p411_p1)
}
  0x22   :  { %s491_s1 = smov 256   ;;  %s492_s17 = smov 16  }
  0x23   :  { %56 = dma.hbm_to_vmem [thread:$0]  %s595_s3, 4096, %s51_s8, [#allocation8], %s491_s1, %s491_s1, %s492_s17  }
  0x24   :  { %s493_s20 = smov [#allocation2]   ;;  %s494_s22 = smov [#allocation6]  }
  0x25   :  { %s19_s21 = sshll.u32 %s493_s20, 4  ;;  %s41_s23 = sshll.u32 %s494_s22, 4  ;;  %s20_s21 = int_to_ptr.vmem [resolvable:$true] %s19_s21  ;;  %s42_s23 = int_to_ptr.vmem [resolvable:$true] %s41_s23 }
  0x26   :  { %s415_s26 = scalar_lea.hbm %s592_s0, 32 }
  0x27   :  { %p416_p2 = scmp.ne.s32.totalorder %s592_s0, %s415_s26  ;;  %p419_p3 = scmp.lt.u32.totalorder %s415_s26, %s592_s0 }
  0x29   :  { %p421_p4 = pnand %p419_p3, %p416_p2 }
  0x2b   :  { %424 = shalt.err (!%p421_p4)
}
  0x2c   :  { %s425_s3 = scalar_lea.vmem %s20_s21, 32  ;;  %p430_p6 = scmp.lt.s32.totalorder %s20_s21, %s20_s21 }
  0x2d   :  { %p426_p5 = scmp.ne.s32.totalorder %s20_s21, %s425_s3  ;;  %p431_p7 = scmp.lt.s32.totalorder %s425_s3, %s425_s3 }
  0x2f   :  { %p432_p8 = por %p431_p7, %p430_p6 }
  0x31   :  { %p433_p9 = pnand %p432_p8, %p426_p5 }
  0x33   :  { %436 = shalt.err (!%p433_p9)
}
  0x34   :  { %22 = dma.hbm_to_vmem [thread:$0]  %s592_s0, 32, %s20_s21, [#allocation3]  }
  0x35   :  { %s437_s10 = scalar_lea.hbm %s594_s2, 16 }
  0x36   :  { %p438_p10 = scmp.ne.s32.totalorder %s594_s2, %s437_s10  ;;  %p441_p11 = scmp.lt.u32.totalorder %s437_s10, %s594_s2 }
  0x38   :  { %p443_p12 = pnand %p441_p11, %p438_p10 }
  0x3a   :  { %446 = shalt.err (!%p443_p12)
}
  0x3b   :  { %s447_s15 = scalar_lea.vmem %s42_s23, 16  ;;  %s451_s16 = scalar_lea.vmem %s42_s23, 32 }
  0x3c   :  { %p448_p13 = scmp.ne.s32.totalorder %s42_s23, %s447_s15  ;;  %p452_p0 = scmp.lt.s32.totalorder %s42_s23, %s42_s23 }
  0x3d   :  { %p453_p1 = scmp.lt.s32.totalorder %s451_s16, %s447_s15 }
  0x3f   :  { %p454_p2 = por %p453_p1, %p452_p0 }
  0x41   :  { %p455_p3 = pnand %p454_p2, %p448_p13 }
  0x43   :  { %458 = shalt.err (!%p455_p3)
}
  0x44   :  { %44 = dma.hbm_to_vmem [thread:$0]  %s594_s2, 16, %s42_s23, [#allocation5]  }
  0x45   :  { %s495_s17 = smov [#allocation9]   ;;  %s459_s21 = scalar_lea.hbm %s596_s4, 32 }
  0x46   :  { %s63_s18 = sshll.u32 %s495_s17, 4  ;;  %p460_p4 = scmp.ne.s32.totalorder %s596_s4, %s459_s21  ;;  %s64_s18 = int_to_ptr.vmem [resolvable:$true] %s63_s18 }
  0x47   :  { %p463_p5 = scmp.lt.u32.totalorder %s459_s21, %s596_s4 }
  0x49   :  { %p465_p6 = pnand %p463_p5, %p460_p4 }
  0x4b   :  { %468 = shalt.err (!%p465_p6)
}
  0x4c   :  { %s469_s27 = scalar_lea.vmem %s64_s18, 32  ;;  %p474_p8 = scmp.lt.s32.totalorder %s64_s18, %s64_s18 }
  0x4d   :  { %p470_p7 = scmp.ne.s32.totalorder %s64_s18, %s469_s27  ;;  %p475_p9 = scmp.lt.s32.totalorder %s469_s27, %s469_s27 }
  0x4f   :  { %p476_p10 = por %p475_p9, %p474_p8 }
  0x51   :  { %p477_p11 = pnand %p476_p10, %p470_p7 }
  0x53   :  { %480 = shalt.err (!%p477_p11)
}
  0x54   :  { %66 = dma.hbm_to_vmem [thread:$0]  %s596_s4, 32, %s64_s18, [#allocation8]  }
  0x55   :  { %481 = dma.done.wait [#allocation3], 32  }
  0x56   :  { %482 = vsyncadd [#allocation3], 4294967264 }
  0x57   :  { %483 = dma.done.wait [#allocation5], 528  }
  0x58   :  { %484 = vsyncadd [#allocation5], 4294966768 }
  0x59   :  { %485 = dma.done.wait [#allocation8], 4128  }
  0x5a   :  { %486 = vsyncadd [#allocation8], 4294963168  ;;  %v496_v0 = vmov 0.0|0.0   ;;  %vm497_vm0 = vmmov 0   ;;  %v498_v1 = vmov 0.0   ;;  %v83_v2 = vld [vmem:[#allocation4] sm:$0xff]  ;;  %v202_v61 = vlaneseq }
  0x5b   :  { %321 = vmatprep.subr.bf16.mxu0 %v496_v0  ;;  %318 = vmatprep.mubr.msk.f32.mxu0 %vm497_vm0, %v498_v1  ;;  %v84_v3 = vld [vmem:[#allocation4 + $0x8] sm:$0xff]  ;;  %v85_v4 = vld [vmem:[#allocation4 + $0x10] sm:$0xff]  ;;  %v86_v6 = vld [vmem:[#allocation4 + $0x18] sm:$0xff]  ;;  %vm94_vm1 = vcmask 261120  }
  0x5c   :  { %276 = vmatprep.mubr.f32.mxu1 %v498_v1  ;;  %v322_v5 = vpack.c.bf16 %v84_v3, %v83_v2  ;;  %v169_v7 = vld [vmem:[#allocation7 + $0x8] sm:$0xff]  ;;  %v171_v8 = vld [vmem:[#allocation7 + $0x18] sm:$0xff]  ;;  %v168_v9 = vld [vmem:[#allocation7] sm:$0xff]  ;;  %v325_v11 = vpack.c.bf16 %v86_v6, %v85_v4  ;;  %v203_v62 = vshrl.u32 %v202_v61, 7 }
  0x5d   :  { %v170_v10 = vld [vmem:[#allocation7 + $0x10] sm:$0xff]  ;;  %v327_v12 = vpack.c.bf16 %v171_v8, %v169_v7  ;;  %v173_v14 = vld [vmem:[#allocation7 + $0x28] sm:$0xff]  ;;  %v175_v15 = vld [vmem:[#allocation7 + $0x38] sm:$0xff] }
  0x5e   :  { %323 = vmatpush3.bf16.msra.mxu0 %v322_v5  ;;  %v329_v13 = vpack.c.bf16 %v170_v10, %v168_v9  ;;  %v172_v16 = vld [vmem:[#allocation7 + $0x20] sm:$0xff]  ;;  %v331_v17 = vpack.c.bf16 %v175_v15, %v173_v14  ;;  %v174_v18 = vld [vmem:[#allocation7 + $0x30] sm:$0xff]  ;;  %v177_v19 = vld [vmem:[#allocation7 + $0x48] sm:$0xff]  ;;  %v204_v63 = vsub.s32 0, %v203_v62  ;;  %v208_v1 = vsub.s32 1, %v203_v62 }
  0x5f   :  { %324 = vmatprep.subr.bf16.mxu0 %v496_v0  ;;  %v179_v20 = vld [vmem:[#allocation7 + $0x58] sm:$0xff]  ;;  %328 = vmatprep.subr.bf16.mxu1 %v327_v12  ;;  %v333_v21 = vpack.c.bf16 %v174_v18, %v172_v16  ;;  %v176_v24 = vld [vmem:[#allocation7 + $0x40] sm:$0xff]  ;;  %v178_v25 = vld [vmem:[#allocation7 + $0x50] sm:$0xff] }
  0x60   :  { %330 = vmatpush1.bf16.msra.mxu1 %v329_v13  ;;  %v82_v22 = vld [vmem:[#allocation2] sm:$0x3]  ;;  %v335_v23 = vpack.c.bf16 %v179_v20, %v177_v19  ;;  %v181_v26 = vld [vmem:[#allocation7 + $0x68] sm:$0xff]  ;;  %v337_v28 = vpack.c.bf16 %v178_v25, %v176_v24  ;;  %v180_v30 = vld [vmem:[#allocation7 + $0x60] sm:$0xff] }
  0x61   :  { %332 = vmatprep.subr.bf16.mxu1 %v331_v17  ;;  %v183_v27 = vld [vmem:[#allocation7 + $0x78] sm:$0xff]  ;;  %v182_v31 = vld [vmem:[#allocation7 + $0x70] sm:$0xff]  ;;  %v185_v32 = vld [vmem:[#allocation7 + $0x88] sm:$0xff] }
  0x62   :  { %326 = vmatpush3.bf16.msra.mxu0 %v325_v11  ;;  %v339_v29 = vpack.c.bf16 %v183_v27, %v181_v26  ;;  %v187_v33 = vld [vmem:[#allocation7 + $0x98] sm:$0xff]  ;;  %v341_v34 = vpack.c.bf16 %v182_v31, %v180_v30  ;;  %v184_v36 = vld [vmem:[#allocation7 + $0x80] sm:$0xff]  ;;  %v186_v37 = vld [vmem:[#allocation7 + $0x90] sm:$0xff] }
  0x63   :  { %v343_v35 = vpack.c.bf16 %v187_v33, %v185_v32  ;;  %v189_v38 = vld [vmem:[#allocation7 + $0xa8] sm:$0xff]  ;;  %v191_v39 = vld [vmem:[#allocation7 + $0xb8] sm:$0xff]  ;;  %v345_v40 = vpack.c.bf16 %v186_v37, %v184_v36  ;;  %v188_v42 = vld [vmem:[#allocation7 + $0xa0] sm:$0xff] }
  0x64   :  { %334 = vmatpush1.bf16.msra.mxu1 %v333_v21  ;;  %v347_v41 = vpack.c.bf16 %v191_v39, %v189_v38  ;;  %v190_v43 = vld [vmem:[#allocation7 + $0xb0] sm:$0xff]  ;;  %v193_v44 = vld [vmem:[#allocation7 + $0xc8] sm:$0xff]  ;;  %v195_v45 = vld [vmem:[#allocation7 + $0xd8] sm:$0xff] }
  0x65   :  { %319 = vmatmul.mubr.msk.f32.vlgmr.msra.gmra.mrb[0].mxu0 %vm94_vm1, %v82_v22  ;;  %336 = vmatprep.subr.bf16.mxu1 %v335_v23  ;;  %v349_v46 = vpack.c.bf16 %v190_v43, %v188_v42  ;;  %v351_v47 = vpack.c.bf16 %v195_v45, %v193_v44  ;;  %v192_v48 = vld [vmem:[#allocation7 + $0xc0] sm:$0xff]  ;;  %v194_v49 = vld [vmem:[#allocation7 + $0xd0] sm:$0xff]  ;;  %v197_v50 = vld [vmem:[#allocation7 + $0xe8] sm:$0xff] }
  0x66   :  { %v199_v51 = vld [vmem:[#allocation7 + $0xf8] sm:$0xff]  ;;  %v353_v52 = vpack.c.bf16 %v194_v49, %v192_v48  ;;  %v196_v54 = vld [vmem:[#allocation7 + $0xe0] sm:$0xff]  ;;  %v198_v55 = vld [vmem:[#allocation7 + $0xf0] sm:$0xff] }
  0x67   :  { %v355_v53 = vpack.c.bf16 %v199_v51, %v197_v50  ;;  %v357_v56 = vpack.c.bf16 %v198_v55, %v196_v54  ;;  %v302_v57 = vld [vmem:[#allocation6] ss:$0 sm:$0xff]  ;;  %v200_v0 = vld [vmem:[#allocation9] sm:$0x3] }
  0x68   :  { %338 = vmatpush1.bf16.msra.mxu1 %v337_v28  ;;  %v205_v2 = vrot.slane %v200_v0, %v204_v63  ;;  %v209_v3 = vrot.slane %v200_v0, %v208_v1 }
  0x69   :  { %340 = vmatprep.subr.bf16.mxu1 %v339_v29 }
  0x6c   :  { %342 = vmatpush1.bf16.msra.mxu1 %v341_v34 }
  0x6d   :  { %344 = vmatprep.subr.bf16.mxu1 %v343_v35 }
  0x70   :  { %346 = vmatpush1.bf16.msra.mxu1 %v345_v40 }
  0x71   :  { %348 = vmatprep.subr.bf16.mxu1 %v347_v41 }
  0x74   :  { %350 = vmatpush1.bf16.msra.mxu1 %v349_v46 }
  0x75   :  { %352 = vmatprep.subr.bf16.mxu1 %v351_v47 }
  0x78   :  { %354 = vmatpush1.bf16.msra.mxu1 %v353_v52 }
  0x79   :  { %356 = vmatprep.subr.bf16.mxu1 %v355_v53 }
  0x7c   :  { %358 = vmatpush1.bf16.msra.mxu1 %v357_v56 }
 0x138   :  { %v164_v58 = vpop.f32.mrb[0].mxu0 }
 0x139   :  { %v165_v59 = vadd.f32 %v302_v57, %v164_v58  ;;  %v320_v60 = vpop.f32.mrb[1].mxu0 }
 0x13b   :  { %277 = vmatmul.mubr.f32.vlgmr.msra.gmra.mrb[0].mxu1 %v165_v59 }
 0x20e   :  { %v278_v4 = vpop.f32.mrb[0].mxu1 }
 0x20f   :  { %v279_v5 = vadd.f32 %v278_v4, %v205_v2  ;;  %v280_v6 = vpop.f32.mrb[1].mxu1 }
 0x210   :  { %v281_v7 = vadd.f32 %v280_v6, %v209_v3 }
 0x212   :  { %v285_v8 = vcombine.low %v279_v5, %v281_v7 }
 0x214   :  { %304 = vst.sshfl [vmem:[%s597_s5] sm:$0x33 pattern:$0x76325410] %v285_v8 }
 0x215   :  { %299 = vsyncpa [#allocation3], 1 }
 0x216   :  { %300 = vsyncpa [#allocation5], 1 }
 0x217   :  { %301 = vsyncpa [#allocation8], 1 }

// kernel: tile.28
= control target key start
LH: loop header
LB: loop body
LE: loop exit
PB: predicated region body
PF: predicated region fallthrough
CT: control target
= control target key end

     0   :  { %s22_s0 = inlined_call_operand.vmem [shape: f32[32], index: 0, kind: input, shape index: {}]   ;;  %s23_s1 = inlined_call_operand.vmem [shape: f32[6,32], index: 1, kind: output, shape index: {}]  }
   0x1   :  { %v4_v0 = vld [vmem:[%s22_s0] ss:$0 sm:$0xff] }
   0x2   :  { %5 = vst [vmem:[%s23_s1] sm:$0xff] %v4_v0 }

// kernel: tile.29
= control target key start
LH: loop header
LB: loop body
LE: loop exit
PB: predicated region body
PF: predicated region fallthrough
CT: control target
= control target key end

     0   :  { %s43_s8 = smov 96   ;;  %s19_s9 = smov 3  ;;  %vm4_vm0 = vcmask 261120   ;;  %vm10_vm1 = vcmask 1048320   ;;  %vm16_vm2 = vcmask 785920   ;;  %vm23_vm3 = vcmask 523520   ;;  %s74_s0 = inlined_call_operand.vmem [shape: f32[6,32], index: 0, kind: input, shape index: {}]   ;;  %s75_s1 = inlined_call_operand.vmem [shape: f32[1,192], index: 1, kind: output, shape index: {}]  }
   0x1   :  { %v36_v0 = vld [vmem:[%s74_s0 + $0x3] sm:$0x1]   ;;  %v37_v1 = vld [vmem:[%s74_s0 + $0x2] sm:$0x1]   ;;  %v38_v2 = vld [vmem:[%s74_s0 + $0x1] ss:$4 sm:%s19_s9]  }
   0x2   :  { %8 = vrot.lane.b32.xlu0 %v36_v0, %s43_s8  ;;  %s2_s14 = smov 3  ;;  %s44_s15 = smov 32  }
   0x3   :  { %21 = vrot.lane.b32.xlu1 %v38_v2, %s44_s15  ;;  %v3_v3 = vld [vmem:[%s74_s0] ss:$4 sm:%s2_s14]   ;;  %s45_s0 = smov 64  }
   0x4   :  { %5 = vst.msk [vmem:[#allocation0] ss:$8 sm:$0x3] %vm4_vm0, %v3_v3  }
   0x6   :  { %14 = vrot.lane.b32.xlu0 %v37_v1, %s45_s0 }
  0x74   :  { %v9_v4 = vpop.permute.xlu0 %8  }
  0x75   :  { %11 = vst.msk [vmem:[#allocation0] sm:$0x1] %vm10_vm1, %v9_v4   ;;  %v22_v5 = vpop.permute.xlu1 %21  }
  0x78   :  { %v15_v6 = vpop.permute.xlu0 %14  }
  0x79   :  { %17 = vst.msk [vmem:[#allocation0] sm:$0x1] %vm16_vm2, %v15_v6  }
  0x7a   :  { %24 = vst.msk [vmem:[#allocation0] ss:$8 sm:$0x3] %vm23_vm3, %v22_v5  }
  0x81   :  { %v28_v7 = vld [vmem:[#allocation0] sm:$0x1]  ;;  %v32_v8 = vld [vmem:[#allocation0 + $0x8] sm:$0x1] }
  0x82   :  { %30 = vst [vmem:[%s75_s1] sm:$0x1] %v28_v7  ;;  %39 = vst [vmem:[%s75_s1 + $0x1] sm:$0x1] %v32_v8 }

// kernel: decoder_forward.11
= control target key start
LH: loop header
LB: loop body
LE: loop exit
PB: predicated region body
PF: predicated region fallthrough
CT: control target
= control target key end

     0   :  { %v20_v0 = vlaneseq  ;;  %vm66_vm0 = vcmask 1043456   ;;  %vm67_vm1 = vcmask 523268   ;;  %vm70_vm2 = vcmask 1041408   ;;  %s134_s1 = inlined_call_operand.vmem [shape: f32[1,192], index: 1, kind: input, shape index: {}]   ;;  %s135_s2 = inlined_call_operand.vmem [shape: f32[1,192], index: 2, kind: input, shape index: {}]   ;;  %s136_s0 = inlined_call_operand.vmem [shape: f32[12,192], index: 0, kind: input, shape index: {}]   ;;  %s137_s3 = inlined_call_operand.vmem [shape: bf16[12,192], index: 3, kind: output, shape index: {}]  }
   0x1   :  { %v18_v2 = vld [vmem:[%s134_s1] sm:$0x3]  ;;  %v15_v7 = vld [vmem:[%s136_s0 + $0x8] sm:$0xff]  ;;  %v16_v8 = vld [vmem:[%s136_s0 + $0x10] sm:$0xf]  ;;  %vm71_vm3 = vcmask 521220  }
   0x2   :  { %v21_v1 = vshrl.u32 %v20_v0, 7  ;;  %v34_v3 = vld [vmem:[%s135_s2] sm:$0x3]  ;;  %v17_v9 = vld [vmem:[%s136_s0 + $0x18] sm:$0xf]  ;;  %vm68_vm4 = vmor %vm67_vm1, %vm66_vm0 }
   0x3   :  { %v14_v4 = vld [vmem:[%s136_s0] sm:$0xff]  ;;  %vm72_vm5 = vmor %vm71_vm3, %vm70_vm2 }
   0x4   :  { %v22_v5 = vsub.s32 0, %v21_v1  ;;  %v26_v6 = vsub.s32 1, %v21_v1 }
   0x6   :  { %v23_v10 = vrot.slane %v18_v2, %v22_v5  ;;  %v27_v11 = vrot.slane %v18_v2, %v26_v6  ;;  %v39_v12 = vrot.slane %v34_v3, %v22_v5  ;;  %v43_v13 = vrot.slane %v34_v3, %v26_v6 }
   0x8   :  { %v30_v14 = vmul.f32 %v23_v10, %v14_v4  ;;  %v31_v15 = vmul.f32 %v27_v11, %v15_v7  ;;  %v32_v16 = vmul.f32 %v23_v10, %v16_v8  ;;  %v33_v17 = vmul.f32 %v27_v11, %v17_v9 }
   0xa   :  { %v46_v18 = vadd.f32 %v39_v12, %v30_v14  ;;  %v47_v19 = vadd.f32 %v43_v13, %v31_v15  ;;  %v48_v20 = vadd.f32 %v39_v12, %v32_v16  ;;  %v49_v21 = vadd.f32 %v43_v13, %v33_v17 }
   0xc   :  { %82 = vtanh.f32 %v46_v18 }
   0xd   :  { %84 = vtanh.f32 %v47_v19 }
   0xe   :  { %86 = vtanh.f32 %v48_v20 }
   0xf   :  { %88 = vtanh.f32 %v49_v21 }
  0x16   :  { %v83_v22 = vpop.eup %82 }
  0x17   :  { %v85_v23 = vpop.eup %84 }
  0x18   :  { %v87_v24 = vpop.eup %86  ;;  %v80_v25 = vpack.c.bf16 %v85_v23, %v83_v22 }
  0x19   :  { %v89_v26 = vpop.eup %88 }
  0x1a   :  { %69 = vst.msk [vmem:[%s137_s3] sm:$0xff] %vm68_vm4, %v80_v25  ;;  %v81_v27 = vpack.c.bf16 %v89_v26, %v87_v24 }
  0x1c   :  { %73 = vst.msk [vmem:[%s137_s3 + $0x8] sm:$0x33] %vm72_vm5, %v81_v27 }

// kernel: decoder_forward.10
= control target key start
LH: loop header
LB: loop body
LE: loop exit
PB: predicated region body
PF: predicated region fallthrough
CT: control target
= control target key end

     0   :  { %v14_v0 = vlaneseq  ;;  %vm25_vm0 = vcmask 1043456   ;;  %vm34_vm1 = vcmask 523264   ;;  %vm36_vm2 = vcmask 519168   ;;  %s186_s0 = inlined_call_operand.vmem [shape: f32[12,192], index: 0, kind: input, shape index: {}]   ;;  %s187_s1 = inlined_call_operand.vmem [shape: f32[1,192], index: 1, kind: output, shape index: {0}]   ;;  %s188_s2 = inlined_call_operand.vmem [shape: f32[1,192], index: 2, kind: output, shape index: {1}]  }
   0x1   :  { %v20_v1 = vld [vmem:[%s186_s0] sm:$0xff]  ;;  %v21_v2 = vld [vmem:[%s186_s0 + $0x8] sm:$0xff]  ;;  %v22_v3 = vld [vmem:[%s186_s0 + $0x10] sm:$0xf]  ;;  %v121_v8 = vmov 0.0  }
   0x2   :  { %vm147_vm3 = vcmp.lt.s32.totalorder %v14_v0, 192  ;;  %v23_v5 = vld [vmem:[%s186_s0 + $0x18] sm:$0xf]  ;;  %v26_v6 = vsel %vm25_vm0, %v22_v3, 0.0  ;;  %v35_v7 = vsel %vm34_vm1, %v21_v2, 0.0  ;;  %v70_v11 = vmul.f32 %v20_v1, %v20_v1 }
   0x3   :  { %18 = vst.msk [vmem:[%s187_s1] sm:$0x3] %vm147_vm3, %v121_v8  ;;  %v27_v9 = vadd.f32 %v26_v6, %v20_v1  ;;  %v37_v10 = vsel %vm36_vm2, %v23_v5, 0.0  ;;  %19 = vst.msk [vmem:[%s188_s2] sm:$0x3] %vm147_vm3, %v121_v8  ;;  %v71_v13 = vmul.f32 %v21_v2, %v21_v2  ;;  %v72_v14 = vmul.f32 %v22_v3, %v22_v3 }
   0x4   :  { %v38_v12 = vadd.f32 %v37_v10, %v35_v7  ;;  %v73_v16 = vmul.f32 %v23_v5, %v23_v5  ;;  %v122_v24 = vmov 1966171168   ;;  %v52_v35 = vshrl.u32 %v14_v0, 7 }
   0x5   :  { %v28_v15 = vrot.slane %v27_v9, 4  ;;  %v74_v18 = vsel %vm25_vm0, %v72_v14, 0.0  ;;  %v82_v19 = vsel %vm34_vm1, %v71_v13, 0.0  ;;  %v49_v25 = vunpack.c.l.s4 %v122_v24 }
   0x6   :  { %v39_v17 = vrot.slane %v38_v12, 4  ;;  %v75_v21 = vadd.f32 %v74_v18, %v70_v11  ;;  %v83_v22 = vsel %vm36_vm2, %v73_v16, 0.0 }
   0x7   :  { %v29_v20 = vadd.f32 %v28_v15, %v27_v9  ;;  %v84_v26 = vadd.f32 %v83_v22, %v82_v19  ;;  %v50_v34 = vunpack.c.0.s8 %v49_v25 }
   0x8   :  { %v40_v23 = vadd.f32 %v39_v17, %v38_v12  ;;  %v76_v28 = vrot.slane %v75_v21, 4 }
   0x9   :  { %v30_v27 = vrot.slane %v29_v20, 2  ;;  %v85_v30 = vrot.slane %v84_v26, 4  ;;  %v53_v44 = vsub.s32 %v50_v34, %v52_v35 }
   0xa   :  { %v41_v29 = vrot.slane %v40_v23, 2  ;;  %v77_v32 = vadd.f32 %v76_v28, %v75_v21  ;;  %v24_v52 = vld [vmem:[%s187_s1] sm:$0x3] }
   0xb   :  { %v31_v31 = vadd.f32 %v30_v27, %v29_v20  ;;  %v86_v36 = vadd.f32 %v85_v30, %v84_v26  ;;  %v69_v57 = vld [vmem:[%s188_s2] sm:$0x3] }
   0xc   :  { %v42_v33 = vadd.f32 %v41_v29, %v40_v23  ;;  %v78_v38 = vrot.slane %v77_v32, 2 }
   0xd   :  { %v32_v37 = vrot.slane %v31_v31, 1  ;;  %v87_v40 = vrot.slane %v86_v36, 2 }
   0xe   :  { %v43_v39 = vrot.slane %v42_v33, 1  ;;  %v79_v42 = vadd.f32 %v78_v38, %v77_v32 }
   0xf   :  { %v33_v41 = vadd.f32 %v32_v37, %v31_v31  ;;  %v88_v45 = vadd.f32 %v87_v40, %v86_v36 }
  0x10   :  { %v44_v43 = vadd.f32 %v43_v39, %v42_v33  ;;  %v80_v46 = vrot.slane %v79_v42, 1 }
  0x11   :  { %v89_v48 = vrot.slane %v88_v45, 1 }
  0x12   :  { %v47_v47 = vcombine.low %v33_v41, %v44_v43  ;;  %v81_v49 = vadd.f32 %v80_v46, %v79_v42 }
  0x13   :  { %v90_v51 = vadd.f32 %v89_v48, %v88_v45 }
  0x14   :  { %v54_v50 = vrot.slane %v47_v47, %v53_v44 }
  0x15   :  { %v93_v54 = vcombine.low %v81_v49, %v90_v51 }
  0x16   :  { %v61_v53 = vrot.slane %v54_v50, %v53_v44 }
  0x17   :  { %v100_v56 = vrot.slane %v93_v54, %v53_v44 }
  0x18   :  { %v63_v55 = vadd.f32 %v61_v53, %v24_v52 }
  0x19   :  { %v107_v58 = vrot.slane %v100_v56, %v53_v44 }
  0x1a   :  { %68 = vst.msk [vmem:[%s187_s1] sm:$0x3] %vm147_vm3, %v63_v55 }
  0x1b   :  { %v109_v59 = vadd.f32 %v107_v58, %v69_v57 }
  0x1d   :  { %110 = vst.msk [vmem:[%s188_s2] sm:$0x3] %vm147_vm3, %v109_v59 }

// kernel: decoder_forward.9
= control target key start
LH: loop header
LB: loop body
LE: loop exit
PB: predicated region body
PF: predicated region fallthrough
CT: control target
= control target key end

     0   :  { %8 = vsyncpa [#allocation3], 0  ;;  %s1282_s0 = inlined_call_operand.vmem [shape: bf16[6,512], index: 0, kind: input, shape index: {}]   ;;  %s1283_s1 = inlined_call_operand.hbm [shape: bf16[512,384], index: 1, kind: input, shape index: {}]   ;;  %s1284_s2 = inlined_call_operand.hbm [shape: f32[1,384], index: 2, kind: input, shape index: {}]   ;;  %s1285_s3 = inlined_call_operand.vmem [shape: f32[6,384], index: 3, kind: output, shape index: {}]  }
   0x1   :  { %9 = vsyncpa [#allocation5], 0  ;;  %s1219_s12 = smov [#allocation2]   ;;  %s1171_s16 = scalar_lea.hbm %s1283_s1, 12288 }
   0x2   :  { %s17_s13 = sshll.u32 %s1219_s12, 4  ;;  %p1172_p0 = scmp.ne.s32.totalorder %s1283_s1, %s1171_s16  ;;  %s18_s13 = int_to_ptr.vmem [resolvable:$true] %s17_s13 }
   0x3   :  { %p1175_p1 = scmp.lt.u32.totalorder %s1171_s16, %s1283_s1 }
   0x5   :  { %p1177_p2 = pnand %p1175_p1, %p1172_p0 }
   0x7   :  { %1180 = shalt.err (!%p1177_p2)
}
   0x8   :  { %s1181_s21 = scalar_lea.vmem %s18_s13, 12288  ;;  %p1186_p4 = scmp.lt.s32.totalorder %s18_s13, %s18_s13 }
   0x9   :  { %p1182_p3 = scmp.ne.s32.totalorder %s18_s13, %s1181_s21  ;;  %p1187_p5 = scmp.lt.s32.totalorder %s1181_s21, %s1181_s21 }
   0xb   :  { %p1188_p6 = por %p1187_p5, %p1186_p4 }
   0xd   :  { %p1189_p7 = pnand %p1188_p6, %p1182_p3 }
   0xf   :  { %1192 = shalt.err (!%p1189_p7)
}
  0x10   :  { %s1220_s22 = smov 192   ;;  %s1221_s23 = smov 12  }
  0x11   :  { %23 = dma.hbm_to_vmem [thread:$0]  %s1283_s1, 12288, %s18_s13, [#allocation3], %s1220_s22, %s1220_s22, %s1221_s23  }
  0x12   :  { %s1222_s26 = smov [#allocation4]   ;;  %s1193_s30 = scalar_lea.hbm %s1284_s2, 48 }
  0x13   :  { %s30_s27 = sshll.u32 %s1222_s26, 4  ;;  %p1194_p8 = scmp.ne.s32.totalorder %s1284_s2, %s1193_s30  ;;  %s31_s27 = int_to_ptr.vmem [resolvable:$true] %s30_s27 }
  0x14   :  { %p1197_p9 = scmp.lt.u32.totalorder %s1193_s30, %s1284_s2 }
  0x16   :  { %p1199_p10 = pnand %p1197_p9, %p1194_p8 }
  0x18   :  { %1202 = shalt.err (!%p1199_p10)
}
  0x19   :  { %s1203_s8 = scalar_lea.vmem %s31_s27, 48  ;;  %s1207_s1 = scalar_lea.vmem %s31_s27, 64 }
  0x1a   :  { %p1204_p11 = scmp.ne.s32.totalorder %s31_s27, %s1203_s8  ;;  %p1208_p12 = scmp.lt.s32.totalorder %s31_s27, %s31_s27 }
  0x1b   :  { %p1209_p13 = scmp.lt.s32.totalorder %s1207_s1, %s1203_s8 }
  0x1d   :  { %p1210_p0 = por %p1209_p13, %p1208_p12 }
  0x1f   :  { %p1211_p1 = pnand %p1210_p0, %p1204_p11 }
  0x21   :  { %1214 = shalt.err (!%p1211_p1)
}
  0x22   :  { %33 = dma.hbm_to_vmem [thread:$0]  %s1284_s2, 48, %s31_s27, [#allocation5]  }
  0x23   :  { %1215 = dma.done.wait [#allocation3], 12288  }
  0x24   :  { %1216 = vsyncadd [#allocation3], 4294955008 }
  0x25   :  { %1217 = dma.done.wait [#allocation5], 48  }
  0x26   :  { %1218 = vsyncadd [#allocation5], 4294967248  ;;  %v1039_v0 = vld [vmem:[#allocation2 + $0x4] ss:$12 sps:$4 sm:$0xff]   ;;  %v1041_v1 = vld [vmem:[#allocation2] ss:$12 sps:$4 sm:$0xff]  }
  0x27   :  { %714 = vmatprep.subr.bf16.mxu0 %v1039_v0  ;;  %v1042_v2 = vld [vmem:[#allocation2 + $0x1c] ss:$12 sps:$4 sm:$0xff]   ;;  %v1044_v3 = vld [vmem:[#allocation2 + $0x18] ss:$12 sps:$4 sm:$0xff]   ;;  %v1045_v4 = vld [vmem:[#allocation2 + $0x34] ss:$12 sps:$4 sm:$0xff]  }
  0x28   :  { %715 = vmatpush1.bf16.msra.mxu0 %v1041_v1  ;;  %v1047_v5 = vld [vmem:[#allocation2 + $0x30] ss:$12 sps:$4 sm:$0xff]   ;;  %v1048_v6 = vld [vmem:[#allocation2 + $0x4c] ss:$12 sps:$4 sm:$0xff]   ;;  %v1050_v7 = vld [vmem:[#allocation2 + $0x48] ss:$12 sps:$4 sm:$0xff]  }
  0x29   :  { %716 = vmatprep.subr.bf16.mxu0 %v1042_v2  ;;  %v1051_v8 = vld [vmem:[#allocation2 + $0x64] ss:$12 sps:$4 sm:$0xff]   ;;  %v1065_v9 = vld [vmem:[#allocation2 + $0xc8] ss:$12 sps:$4 sm:$0xff]   ;;  %v1053_v11 = vld [vmem:[#allocation2 + $0x60] ss:$12 sps:$4 sm:$0xff]  }
  0x2a   :  { %v1067_v10 = vld [vmem:[#allocation2 + $0x8] ss:$12 sps:$4 sm:$0xff]   ;;  %985 = vmatprep.subr.bf16.mxu1 %v1065_v9  ;;  %v1070_v12 = vld [vmem:[#allocation2 + $0xe0] ss:$12 sps:$4 sm:$0xff]   ;;  %v1056_v15 = vld [vmem:[#allocation2 + $0x78] ss:$12 sps:$4 sm:$0xff]  }
  0x2b   :  { %986 = vmatpush3.bf16.msra.mxu1 %v1067_v10  ;;  %v1054_v13 = vld [vmem:[#allocation2 + $0x7c] ss:$12 sps:$4 sm:$0xff]   ;;  %v1072_v14 = vld [vmem:[#allocation2 + $0x20] ss:$12 sps:$4 sm:$0xff]   ;;  %v1075_v17 = vld [vmem:[#allocation2 + $0xf8] ss:$12 sps:$4 sm:$0xff]  }
  0x2c   :  { %717 = vmatpush1.bf16.msra.mxu0 %v1044_v3  ;;  %987 = vmatprep.subr.bf16.mxu1 %v1070_v12  ;;  %v1057_v16 = vld [vmem:[#allocation2 + $0x94] ss:$12 sps:$4 sm:$0xff]   ;;  %v1077_v18 = vld [vmem:[#allocation2 + $0x38] ss:$12 sps:$4 sm:$0xff]   ;;  %v1059_v19 = vld [vmem:[#allocation2 + $0x90] ss:$12 sps:$4 sm:$0xff]  }
  0x2d   :  { %718 = vmatprep.subr.bf16.mxu0 %v1045_v4  ;;  %v1080_v20 = vld [vmem:[#allocation2 + $0x110] ss:$12 sps:$4 sm:$0xff]   ;;  %v1060_v22 = vld [vmem:[#allocation2 + $0xac] ss:$12 sps:$4 sm:$0xff]   ;;  %v1085_v23 = vld [vmem:[#allocation2 + $0x128] ss:$12 sps:$4 sm:$0xff]  }
  0x2e   :  { %v1082_v21 = vld [vmem:[#allocation2 + $0x50] ss:$12 sps:$4 sm:$0xff]   ;;  %v1062_v24 = vld [vmem:[#allocation2 + $0xa8] ss:$12 sps:$4 sm:$0xff]   ;;  %v1090_v27 = vld [vmem:[#allocation2 + $0x140] ss:$12 sps:$4 sm:$0xff]  }
  0x2f   :  { %988 = vmatpush3.bf16.msra.mxu1 %v1072_v14  ;;  %v1087_v25 = vld [vmem:[#allocation2 + $0x68] ss:$12 sps:$4 sm:$0xff]   ;;  %v1063_v26 = vld [vmem:[#allocation2 + $0xc4] ss:$12 sps:$4 sm:$0xff]   ;;  %v1066_v28 = vld [vmem:[#allocation2 + $0xc0] ss:$12 sps:$4 sm:$0xff]  }
  0x30   :  { %719 = vmatpush1.bf16.msra.mxu0 %v1047_v5  ;;  %989 = vmatprep.subr.bf16.mxu1 %v1075_v17  ;;  %v1092_v29 = vld [vmem:[#allocation2 + $0x80] ss:$12 sps:$4 sm:$0xff]   ;;  %v1068_v30 = vld [vmem:[#allocation2 + $0xdc] ss:$12 sps:$4 sm:$0xff]   ;;  %v1095_v31 = vld [vmem:[#allocation2 + $0x158] ss:$12 sps:$4 sm:$0xff]  }
  0x31   :  { %720 = vmatprep.subr.bf16.mxu0 %v1048_v6  ;;  %v1071_v32 = vld [vmem:[#allocation2 + $0xd8] ss:$12 sps:$4 sm:$0xff]   ;;  %v1073_v33 = vld [vmem:[#allocation2 + $0xf4] ss:$12 sps:$4 sm:$0xff]   ;;  %v1100_v35 = vld [vmem:[#allocation2 + $0x170] ss:$12 sps:$4 sm:$0xff]  }
  0x32   :  { %v1097_v34 = vld [vmem:[#allocation2 + $0x98] ss:$12 sps:$4 sm:$0xff]   ;;  %v1076_v37 = vld [vmem:[#allocation2 + $0xf0] ss:$12 sps:$4 sm:$0xff]   ;;  %v1108_v41 = vld [vmem:[#allocation2 + $0x248] ss:$12 sps:$4 sm:$0xff]  }
  0x33   :  { %990 = vmatpush3.bf16.msra.mxu1 %v1077_v18  ;;  %v41_v36 = vld [vmem:[%s1282_s0] sm:$0x77]  ;;  %v1081_v42 = vld [vmem:[#allocation2 + $0x108] ss:$12 sps:$4 sm:$0xff]   ;;  %v1083_v43 = vld [vmem:[#allocation2 + $0x124] ss:$12 sps:$4 sm:$0xff]  }
  0x34   :  { %721 = vmatpush1.bf16.msra.mxu0 %v1050_v7  ;;  %991 = vmatprep.subr.bf16.mxu1 %v1080_v20  ;;  %v1078_v38 = vld [vmem:[#allocation2 + $0x10c] ss:$12 sps:$4 sm:$0xff]   ;;  %v886_v39 = vcombine.high %v41_v36, %v41_v36  ;;  %v1102_v40 = vld [vmem:[#allocation2 + $0xb0] ss:$12 sps:$4 sm:$0xff]   ;;  %v885_v44 = vcombine.low %v41_v36, %v41_v36  ;;  %v1109_v45 = vld [vmem:[#allocation2 + $0x188] ss:$12 sps:$4 sm:$0xff]  }
  0x35   :  { %722 = vmatprep.subr.bf16.mxu0 %v1051_v8  ;;  %v1113_v46 = vld [vmem:[#allocation2 + $0x260] ss:$12 sps:$4 sm:$0xff]   ;;  %v1088_v49 = vld [vmem:[#allocation2 + $0x13c] ss:$12 sps:$4 sm:$0xff]   ;;  %v1118_v50 = vld [vmem:[#allocation2 + $0x278] ss:$12 sps:$4 sm:$0xff]  }
  0x36   :  { %746 = vmatprep.mubr.bf16.mxu0 %v886_v39  ;;  %828 = vmatprep.mubr.bf16.mxu1 %v886_v39  ;;  %v1086_v47 = vld [vmem:[#allocation2 + $0x120] ss:$12 sps:$4 sm:$0xff]   ;;  %v1091_v51 = vld [vmem:[#allocation2 + $0x138] ss:$12 sps:$4 sm:$0xff]   ;;  %v1123_v54 = vld [vmem:[#allocation2 + $0x290] ss:$12 sps:$4 sm:$0xff]  }
  0x37   :  { %992 = vmatpush3.bf16.msra.mxu1 %v1082_v21  ;;  %v1114_v48 = vld [vmem:[#allocation2 + $0x1a0] ss:$12 sps:$4 sm:$0xff]   ;;  %v1119_v53 = vld [vmem:[#allocation2 + $0x1b8] ss:$12 sps:$4 sm:$0xff]   ;;  %v1096_v55 = vld [vmem:[#allocation2 + $0x150] ss:$12 sps:$4 sm:$0xff]  }
  0x38   :  { %723 = vmatpush1.bf16.msra.mxu0 %v1053_v11  ;;  %993 = vmatprep.subr.bf16.mxu1 %v1085_v23  ;;  %v1093_v52 = vld [vmem:[#allocation2 + $0x154] ss:$12 sps:$4 sm:$0xff]   ;;  %v1098_v56 = vld [vmem:[#allocation2 + $0x16c] ss:$12 sps:$4 sm:$0xff]   ;;  %v1124_v57 = vld [vmem:[#allocation2 + $0x1d0] ss:$12 sps:$4 sm:$0xff]  }
  0x39   :  { %724 = vmatprep.subr.bf16.mxu0 %v1054_v13  ;;  %v1128_v58 = vld [vmem:[#allocation2 + $0x2a8] ss:$12 sps:$4 sm:$0xff]   ;;  %v1107_v60 = vld [vmem:[#allocation2 + $0x184] ss:$12 sps:$4 sm:$0xff]   ;;  %v1133_v62 = vld [vmem:[#allocation2 + $0x2c0] ss:$12 sps:$4 sm:$0xff]  }
  0x3a   :  { %v1101_v59 = vld [vmem:[#allocation2 + $0x168] ss:$12 sps:$4 sm:$0xff]   ;;  %v1105_v63 = vld [vmem:[#allocation2 + $0x180] ss:$12 sps:$4 sm:$0xff]   ;;  %v1138_v2 = vld [vmem:[#allocation2 + $0x2d8] ss:$12 sps:$4 sm:$0xff]  }
  0x3b   :  { %994 = vmatpush3.bf16.msra.mxu1 %v1087_v25  ;;  %v1129_v61 = vld [vmem:[#allocation2 + $0x1e8] ss:$12 sps:$4 sm:$0xff]   ;;  %v1134_v1 = vld [vmem:[#allocation2 + $0x200] ss:$12 sps:$4 sm:$0xff]   ;;  %v1110_v5 = vld [vmem:[#allocation2 + $0x198] ss:$12 sps:$4 sm:$0xff]  }
  0x3c   :  { %725 = vmatpush1.bf16.msra.mxu0 %v1056_v15  ;;  %995 = vmatprep.subr.bf16.mxu1 %v1090_v27  ;;  %v1112_v0 = vld [vmem:[#allocation2 + $0x19c] ss:$12 sps:$4 sm:$0xff]   ;;  %v42_v3 = vld [vmem:[%s1282_s0 + $0x8] sm:$0x77]  ;;  %v1122_v11 = vld [vmem:[#allocation2 + $0x1cc] ss:$12 sps:$4 sm:$0xff]  }
  0x3d   :  { %726 = vmatprep.subr.bf16.mxu0 %v1057_v16  ;;  %v888_v4 = vcombine.high %v42_v3, %v42_v3  ;;  %v1139_v6 = vld [vmem:[#allocation2 + $0x218] ss:$12 sps:$4 sm:$0xff]   ;;  %v1117_v7 = vld [vmem:[#allocation2 + $0x1b4] ss:$12 sps:$4 sm:$0xff]   ;;  %v1143_v8 = vld [vmem:[#allocation2 + $0x2f0] ss:$12 sps:$4 sm:$0xff]   ;;  %v887_v12 = vcombine.low %v42_v3, %v42_v3 }
  0x3e   :  { %v1115_v9 = vld [vmem:[#allocation2 + $0x1b0] ss:$12 sps:$4 sm:$0xff]   ;;  %v1120_v13 = vld [vmem:[#allocation2 + $0x1c8] ss:$12 sps:$4 sm:$0xff]   ;;  %v1125_v15 = vld [vmem:[#allocation2 + $0x1e0] ss:$12 sps:$4 sm:$0xff]  }
  0x3f   :  { %996 = vmatpush3.bf16.msra.mxu1 %v1092_v29  ;;  %v1144_v10 = vld [vmem:[#allocation2 + $0x230] ss:$12 sps:$4 sm:$0xff]   ;;  %v1130_v17 = vld [vmem:[#allocation2 + $0x1f8] ss:$12 sps:$4 sm:$0xff]   ;;  %v1137_v18 = vld [vmem:[#allocation2 + $0x214] ss:$12 sps:$4 sm:$0xff]  }
  0x40   :  { %727 = vmatpush1.bf16.msra.mxu0 %v1059_v19  ;;  %997 = vmatprep.subr.bf16.mxu1 %v1095_v31  ;;  %v1127_v14 = vld [vmem:[#allocation2 + $0x1e4] ss:$12 sps:$4 sm:$0xff]   ;;  %v1132_v16 = vld [vmem:[#allocation2 + $0x1fc] ss:$12 sps:$4 sm:$0xff]   ;;  %v1142_v20 = vld [vmem:[#allocation2 + $0x22c] ss:$12 sps:$4 sm:$0xff]  }
  0x41   :  { %728 = vmatprep.subr.bf16.mxu0 %v1060_v22  ;;  %v1135_v19 = vld [vmem:[#allocation2 + $0x210] ss:$12 sps:$4 sm:$0xff]   ;;  %v1140_v21 = vld [vmem:[#allocation2 + $0x228] ss:$12 sps:$4 sm:$0xff]   ;;  %v1147_v23 = vld [vmem:[#allocation2 + $0x240] ss:$12 sps:$4 sm:$0xff]  }
  0x42   :  { %v1149_v22 = vld [vmem:[#allocation2 + $0x244] ss:$12 sps:$4 sm:$0xff]   ;;  %v1156_v29 = vld [vmem:[#allocation2 + $0x288] ss:$12 sps:$4 sm:$0xff]   ;;  %v1159_v31 = vld [vmem:[#allocation2 + $0x2a0] ss:$12 sps:$4 sm:$0xff]  }
  0x43   :  { %998 = vmatpush3.bf16.msra.mxu1 %v1097_v34  ;;  %v1150_v25 = vld [vmem:[#allocation2 + $0x258] ss:$12 sps:$4 sm:$0xff]   ;;  %v1153_v27 = vld [vmem:[#allocation2 + $0x270] ss:$12 sps:$4 sm:$0xff]   ;;  %v1167_v34 = vld [vmem:[#allocation2 + $0x2d4] ss:$12 sps:$4 sm:$0xff]  }
  0x44   :  { %729 = vmatpush1.bf16.msra.mxu0 %v1062_v24  ;;  %999 = vmatprep.subr.bf16.mxu1 %v1100_v35  ;;  %v1152_v24 = vld [vmem:[#allocation2 + $0x25c] ss:$12 sps:$4 sm:$0xff]   ;;  %v1170_v36 = vld [vmem:[#allocation2 + $0x2ec] ss:$12 sps:$4 sm:$0xff]  }
  0x45   :  { %730 = vmatprep.subr.bf16.mxu0 %v1063_v26  ;;  %v1155_v26 = vld [vmem:[#allocation2 + $0x274] ss:$12 sps:$4 sm:$0xff]   ;;  %v1165_v35 = vld [vmem:[#allocation2 + $0x2d0] ss:$12 sps:$4 sm:$0xff]  }
  0x47   :  { %1000 = vmatpush3.bf16.msra.mxu1 %v1102_v40 }
  0x48   :  { %731 = vmatpush1.bf16.msra.mxu0 %v1066_v28  ;;  %1007 = vmatprep.subr.bf16.mxu1 %v1108_v41  ;;  %v1158_v28 = vld [vmem:[#allocation2 + $0x28c] ss:$12 sps:$4 sm:$0xff]  }
  0x49   :  { %732 = vmatprep.subr.bf16.mxu0 %v1068_v30  ;;  %v1161_v30 = vld [vmem:[#allocation2 + $0x2a4] ss:$12 sps:$4 sm:$0xff]  }
  0x4a   :  { %829 = vmatmul.mubr.bf16.vlgmr.msra.gmra.mrb[0].mxu1 %v885_v44 }
  0x4b   :  { %1008 = vmatpush3.bf16.msra.mxu1 %v1109_v45  ;;  %868 = vmatprep.mubr.bf16.mxu1 %v888_v4 }
  0x4c   :  { %733 = vmatpush1.bf16.msra.mxu0 %v1071_v32  ;;  %1009 = vmatprep.subr.bf16.mxu1 %v1113_v46  ;;  %v1164_v32 = vld [vmem:[#allocation2 + $0x2bc] ss:$12 sps:$4 sm:$0xff]   ;;  %v171_v46 = vld [vmem:[#allocation4] sm:$0x7] }
  0x4d   :  { %734 = vmatprep.subr.bf16.mxu0 %v1073_v33  ;;  %v1162_v33 = vld [vmem:[#allocation2 + $0x2b8] ss:$12 sps:$4 sm:$0xff]  }
  0x4f   :  { %1010 = vmatpush3.bf16.msra.mxu1 %v1114_v48 }
  0x50   :  { %735 = vmatpush1.bf16.msra.mxu0 %v1076_v37  ;;  %1011 = vmatprep.subr.bf16.mxu1 %v1118_v50  ;;  %v1168_v37 = vld [vmem:[#allocation2 + $0x2e8] ss:$12 sps:$4 sm:$0xff]  }
  0x51   :  { %736 = vmatprep.subr.bf16.mxu0 %v1078_v38 }
  0x53   :  { %1012 = vmatpush3.bf16.msra.mxu1 %v1119_v53 }
  0x54   :  { %737 = vmatpush1.bf16.msra.mxu0 %v1081_v42  ;;  %1013 = vmatprep.subr.bf16.mxu1 %v1123_v54 }
  0x55   :  { %738 = vmatprep.subr.bf16.mxu0 %v1083_v43  ;;  %v173_v43 = vlaneseq }
  0x57   :  { %1014 = vmatpush3.bf16.msra.mxu1 %v1124_v57 }
  0x58   :  { %739 = vmatpush1.bf16.msra.mxu0 %v1086_v47  ;;  %1015 = vmatprep.subr.bf16.mxu1 %v1128_v58 }
  0x59   :  { %740 = vmatprep.subr.bf16.mxu0 %v1088_v49 }
  0x5b   :  { %1016 = vmatpush3.bf16.msra.mxu1 %v1129_v61 }
  0x5c   :  { %741 = vmatpush1.bf16.msra.mxu0 %v1091_v51  ;;  %1017 = vmatprep.subr.bf16.mxu1 %v1133_v62 }
  0x5d   :  { %742 = vmatprep.subr.bf16.mxu0 %v1093_v52 }
  0x5f   :  { %1018 = vmatpush3.bf16.msra.mxu1 %v1134_v1 }
  0x60   :  { %743 = vmatpush1.bf16.msra.mxu0 %v1096_v55  ;;  %1019 = vmatprep.subr.bf16.mxu1 %v1138_v2 }
  0x61   :  { %744 = vmatprep.subr.bf16.mxu0 %v1098_v56 }
  0x63   :  { %1020 = vmatpush3.bf16.msra.mxu1 %v1139_v6 }
  0x64   :  { %745 = vmatpush1.bf16.msra.mxu0 %v1101_v59  ;;  %1021 = vmatprep.subr.bf16.mxu1 %v1143_v8 }
  0x65   :  { %755 = vmatprep.subr.bf16.mxu0 %v1107_v60 }
  0x67   :  { %747 = vmatmul.mubr.bf16.vlgmr.msra.gmra.mrb[0].mxu0 %v885_v44  ;;  %1022 = vmatpush3.bf16.msra.mxu1 %v1144_v10  ;;  %v174_v44 = vshrl.u32 %v173_v43, 7 }
  0x68   :  { %756 = vmatpush1.bf16.msra.mxu0 %v1105_v63  ;;  %787 = vmatprep.mubr.bf16.mxu0 %v888_v4 }
  0x69   :  { %757 = vmatprep.subr.bf16.mxu0 %v1112_v0  ;;  %v183_v45 = vsub.s32 2, %v174_v44  ;;  %v175_v55 = vsub.s32 0, %v174_v44  ;;  %v179_v56 = vsub.s32 1, %v174_v44 }
  0x6a   :  { %869 = vmatmul.mubr.bf16.vlgmr.msra.gmra.mrb[4].mxu1 %v887_v12 }
  0x6b   :  { %v184_v47 = vrot.slane %v171_v46, %v183_v45  ;;  %v176_v57 = vrot.slane %v171_v46, %v175_v55  ;;  %v180_v58 = vrot.slane %v171_v46, %v179_v56 }
  0x6c   :  { %758 = vmatpush1.bf16.msra.mxu0 %v1110_v5 }
  0x6d   :  { %759 = vmatprep.subr.bf16.mxu0 %v1117_v7 }
  0x70   :  { %760 = vmatpush1.bf16.msra.mxu0 %v1115_v9 }
  0x71   :  { %761 = vmatprep.subr.bf16.mxu0 %v1122_v11 }
  0x74   :  { %762 = vmatpush1.bf16.msra.mxu0 %v1120_v13 }
  0x75   :  { %763 = vmatprep.subr.bf16.mxu0 %v1127_v14 }
  0x78   :  { %764 = vmatpush1.bf16.msra.mxu0 %v1125_v15 }
  0x79   :  { %765 = vmatprep.subr.bf16.mxu0 %v1132_v16 }
  0x7c   :  { %766 = vmatpush1.bf16.msra.mxu0 %v1130_v17 }
  0x7d   :  { %767 = vmatprep.subr.bf16.mxu0 %v1137_v18 }
  0x80   :  { %768 = vmatpush1.bf16.msra.mxu0 %v1135_v19 }
  0x81   :  { %769 = vmatprep.subr.bf16.mxu0 %v1142_v20 }
  0x84   :  { %770 = vmatpush1.bf16.msra.mxu0 %v1140_v21 }
  0x85   :  { %771 = vmatprep.subr.bf16.mxu0 %v1149_v22 }
  0x88   :  { %772 = vmatpush1.bf16.msra.mxu0 %v1147_v23 }
  0x89   :  { %773 = vmatprep.subr.bf16.mxu0 %v1152_v24 }
  0x8c   :  { %774 = vmatpush1.bf16.msra.mxu0 %v1150_v25 }
  0x8d   :  { %775 = vmatprep.subr.bf16.mxu0 %v1155_v26 }
  0x90   :  { %776 = vmatpush1.bf16.msra.mxu0 %v1153_v27 }
  0x91   :  { %777 = vmatprep.subr.bf16.mxu0 %v1158_v28 }
  0x94   :  { %778 = vmatpush1.bf16.msra.mxu0 %v1156_v29 }
  0x95   :  { %779 = vmatprep.subr.bf16.mxu0 %v1161_v30 }
  0x98   :  { %780 = vmatpush1.bf16.msra.mxu0 %v1159_v31 }
  0x99   :  { %781 = vmatprep.subr.bf16.mxu0 %v1164_v32 }
  0x9c   :  { %782 = vmatpush1.bf16.msra.mxu0 %v1162_v33 }
  0x9d   :  { %783 = vmatprep.subr.bf16.mxu0 %v1167_v34 }
  0xa0   :  { %784 = vmatpush1.bf16.msra.mxu0 %v1165_v35 }
  0xa1   :  { %785 = vmatprep.subr.bf16.mxu0 %v1170_v36 }
  0xa4   :  { %786 = vmatpush1.bf16.msra.mxu0 %v1168_v37 }
  0xa7   :  { %788 = vmatmul.mubr.bf16.vlgmr.msra.gmra.mrb[0].mxu0 %v887_v12 }
 0x11d   :  { %v1001_v38 = vpop.f32.mrb[0].mxu1 }
 0x11e   :  { %v1002_v39 = vpop.f32.mrb[1].mxu1 }
 0x11f   :  { %v1003_v40 = vadd.f32 %v1002_v39, %v1001_v38  ;;  %v1004_v41 = vpop.f32.mrb[2].mxu1 }
 0x120   :  { %v1005_v42 = vpop.f32.mrb[3].mxu1 }
 0x121   :  { %v831_v48 = vadd.f32 %v1003_v40, %v184_v47 }
 0x13d   :  { %v1023_v49 = vpop.f32.mrb[4].mxu1 }
 0x13e   :  { %v1024_v50 = vpop.f32.mrb[5].mxu1 }
 0x13f   :  { %v1025_v51 = vadd.f32 %v1024_v50, %v1023_v49  ;;  %v1026_v52 = vpop.f32.mrb[6].mxu1 }
 0x140   :  { %v1027_v53 = vpop.f32.mrb[7].mxu1 }
 0x141   :  { %v871_v54 = vadd.f32 %v1025_v51, %v831_v48 }
 0x143   :  { %878 = vst [vmem:[%s1285_s3 + $0x10] sm:$0x3f] %v871_v54 }
 0x17a   :  { %v789_v59 = vpop.f32.mrb[0].mxu0 }
 0x17b   :  { %v1029_v60 = vadd.f32 %v789_v59, %v176_v57  ;;  %v791_v61 = vpop.f32.mrb[1].mxu0 }
 0x17c   :  { %v1030_v62 = vadd.f32 %v791_v61, %v180_v58  ;;  %v793_v63 = vpop.f32.mrb[2].mxu0 }
 0x17d   :  { %876 = vst [vmem:[%s1285_s3] sm:$0x3f] %v1029_v60  ;;  %v794_v0 = vpop.f32.mrb[3].mxu0 }
 0x17e   :  { %877 = vst [vmem:[%s1285_s3 + $0x8] sm:$0x3f] %v1030_v62 }
 0x17f   :  { %883 = vsyncpa [#allocation3], 1 }
 0x180   :  { %884 = vsyncpa [#allocation5], 1 }

// kernel: tile.38
= control target key start
LH: loop header
LB: loop body
LE: loop exit
PB: predicated region body
PF: predicated region fallthrough
CT: control target
= control target key end

     0   :  { %s28_s0 = inlined_call_operand.vmem [shape: f32[16], index: 0, kind: input, shape index: {}]   ;;  %s29_s1 = inlined_call_operand.vmem [shape: f32[15,16], index: 1, kind: output, shape index: {}]  }
   0x1   :  { %v4_v0 = vld [vmem:[%s28_s0] ss:$0 sm:$0xff] }
   0x2   :  { %5 = vst [vmem:[%s29_s1] sm:$0xff] %v4_v0  ;;  %8 = vst [vmem:[%s29_s1 + $0x8] sm:$0xff] %v4_v0 }

// kernel: tile.39
= control target key start
LH: loop header
LB: loop body
LE: loop exit
PB: predicated region body
PF: predicated region fallthrough
CT: control target
= control target key end

     0   :  { %s20_s8 = smov 3  ;;  %s80_s9 = smov 112   ;;  %vm4_vm0 = vcmask 130048   ;;  %vm10_vm1 = vcmask 1048448   ;;  %vm17_vm2 = vcmask 917248   ;;  %vm24_vm3 = vcmask 786048   ;;  %s127_s0 = inlined_call_operand.vmem [shape: f32[15,16], index: 0, kind: input, shape index: {}]   ;;  %s128_s1 = inlined_call_operand.vmem [shape: f32[1,240], index: 1, kind: output, shape index: {}]  }
   0x1   :  { %v65_v0 = vld [vmem:[%s127_s0 + $0x7] sm:$0x1]   ;;  %v67_v1 = vld [vmem:[%s127_s0 + $0x5] ss:$8 sm:%s20_s8]   ;;  %s13_s12 = smov 3  ;;  %s81_s13 = smov 80  }
   0x2   :  { %8 = vrot.lane.b32.xlu0 %v65_v0, %s80_s9  ;;  %22 = vrot.lane.b32.xlu1 %v67_v1, %s81_s13  ;;  %v66_v2 = vld [vmem:[%s127_s0 + $0x6] ss:$8 sm:%s13_s12]   ;;  %s27_s16 = smov 3  ;;  %s34_s19 = smov 3  ;;  %vm31_vm4 = vcmask 654848   ;;  %vm38_vm5 = vcmask 523648  }
   0x3   :  { %v68_v3 = vld [vmem:[%s127_s0 + $0x4] ss:$8 sm:%s27_s16]   ;;  %s41_s20 = smov 3  ;;  %s82_s21 = smov 96   ;;  %v69_v4 = vld [vmem:[%s127_s0 + $0x3] ss:$8 sm:%s34_s19]  }
   0x4   :  { %s83_s22 = smov 64   ;;  %s2_s25 = smov 3  ;;  %v70_v5 = vld [vmem:[%s127_s0 + $0x2] ss:$8 sm:%s41_s20]   ;;  %vm45_vm6 = vcmask 392448   ;;  %vm52_vm7 = vcmask 261248  }
   0x5   :  { %s48_s28 = smov 3  ;;  %v3_v6 = vld [vmem:[%s127_s0] ss:$8 sm:%s2_s25]   ;;  %s84_s2 = smov 48  }
   0x6   :  { %15 = vrot.lane.b32.xlu0 %v66_v2, %s82_s21  ;;  %29 = vrot.lane.b32.xlu1 %v68_v3, %s83_s22  ;;  %5 = vst.msk [vmem:[#allocation0] ss:$8 sm:$0x3] %vm4_vm0, %v3_v6   ;;  %s85_s3 = smov 32   ;;  %v71_v7 = vld [vmem:[%s127_s0 + $0x1] ss:$8 sm:%s48_s28]  }
   0x7   :  { %s86_s0 = smov 16  }
   0xa   :  { %36 = vrot.lane.b32.xlu0 %v69_v4, %s84_s2  ;;  %43 = vrot.lane.b32.xlu1 %v70_v5, %s85_s3 }
   0xe   :  { %50 = vrot.lane.b32.xlu0 %v71_v7, %s86_s0 }
  0x74   :  { %v9_v8 = vpop.permute.xlu0 %8   ;;  %v23_v9 = vpop.permute.xlu1 %22  }
  0x75   :  { %11 = vst.msk [vmem:[#allocation0] sm:$0x1] %vm10_vm1, %v9_v8  }
  0x78   :  { %v16_v10 = vpop.permute.xlu0 %15   ;;  %v30_v11 = vpop.permute.xlu1 %29  }
  0x79   :  { %18 = vst.msk [vmem:[#allocation0] ss:$8 sm:$0x3] %vm17_vm2, %v16_v10  }
  0x7a   :  { %25 = vst.msk [vmem:[#allocation0] ss:$8 sm:$0x3] %vm24_vm3, %v23_v9  }
  0x7b   :  { %32 = vst.msk [vmem:[#allocation0] ss:$8 sm:$0x3] %vm31_vm4, %v30_v11  }
  0x7c   :  { %v37_v12 = vpop.permute.xlu0 %36   ;;  %v44_v13 = vpop.permute.xlu1 %43  }
  0x7d   :  { %39 = vst.msk [vmem:[#allocation0] ss:$8 sm:$0x3] %vm38_vm5, %v37_v12  }
  0x7e   :  { %46 = vst.msk [vmem:[#allocation0] ss:$8 sm:$0x3] %vm45_vm6, %v44_v13  }
  0x80   :  { %v51_v14 = vpop.permute.xlu0 %50  }
  0x81   :  { %53 = vst.msk [vmem:[#allocation0] ss:$8 sm:$0x3] %vm52_vm7, %v51_v14  }
  0x88   :  { %v57_v15 = vld [vmem:[#allocation0] sm:$0x1]  ;;  %v61_v16 = vld [vmem:[#allocation0 + $0x8] sm:$0x1] }
  0x89   :  { %59 = vst [vmem:[%s128_s1] sm:$0x1] %v57_v15  ;;  %72 = vst [vmem:[%s128_s1 + $0x1] sm:$0x1] %v61_v16 }

// kernel: decoder_forward.13
= control target key start
LH: loop header
LB: loop body
LE: loop exit
PB: predicated region body
PF: predicated region fallthrough
CT: control target
= control target key end

     0   :  { %v14_v0 = vlaneseq  ;;  %vm40_vm0 = vcmask 916480   ;;  %vm31_vm1 = vcmask 1045504   ;;  %vm46_vm3 = vcmask 914432   ;;  %s222_s0 = inlined_call_operand.vmem [shape: f32[30,240], index: 0, kind: input, shape index: {}]   ;;  %s223_s1 = inlined_call_operand.vmem [shape: f32[1,240], index: 1, kind: output, shape index: {0}]   ;;  %s224_s2 = inlined_call_operand.vmem [shape: f32[1,240], index: 2, kind: output, shape index: {1}]  }
   0x1   :  { %v20_v1 = vld [vmem:[%s222_s0] sm:$0xff]  ;;  %v21_v2 = vld [vmem:[%s222_s0 + $0x8] sm:$0xff]  ;;  %v22_v3 = vld [vmem:[%s222_s0 + $0x10] sm:$0xff]  ;;  %v141_v9 = vmov 0.0   ;;  %v142_v45 = vmov 1966171168  }
   0x2   :  { %vm167_vm2 = vcmp.lt.s32.totalorder %v14_v0, 240  ;;  %v23_v5 = vld [vmem:[%s222_s0 + $0x18] sm:$0xff]  ;;  %v25_v6 = vld [vmem:[%s222_s0 + $0x28] sm:$0xff]  ;;  %v29_v7 = vadd.f32 %v22_v3, %v20_v1  ;;  %v41_v8 = vsel %vm40_vm0, %v21_v2, 0.0  ;;  %v24_v10 = vld [vmem:[%s222_s0 + $0x20] sm:$0xff]  ;;  %v80_v14 = vmul.f32 %v20_v1, %v20_v1 }
   0x3   :  { %18 = vst.msk [vmem:[%s223_s1] sm:$0x3] %vm167_vm2, %v141_v9  ;;  %v26_v11 = vld [vmem:[%s222_s0 + $0x30] sm:$0x3f]  ;;  %v42_v12 = vsel %vm40_vm0, %v23_v5, 0.0  ;;  %v44_v13 = vsel %vm40_vm0, %v25_v6, 0.0  ;;  %v81_v19 = vmul.f32 %v21_v2, %v21_v2  ;;  %v82_v21 = vmul.f32 %v22_v3, %v22_v3 }
   0x4   :  { %19 = vst.msk [vmem:[%s224_s2] sm:$0x3] %vm167_vm2, %v141_v9  ;;  %v27_v15 = vld [vmem:[%s222_s0 + $0x38] sm:$0x3f]  ;;  %v30_v16 = vadd.f32 %v29_v7, %v24_v10  ;;  %v32_v17 = vsel %vm31_vm1, %v26_v11, 0.0  ;;  %v43_v18 = vadd.f32 %v42_v12, %v41_v8  ;;  %v83_v22 = vmul.f32 %v23_v5, %v23_v5 }
   0x5   :  { %v47_v20 = vsel %vm46_vm3, %v27_v15, 0.0  ;;  %v84_v25 = vmul.f32 %v24_v10, %v24_v10  ;;  %v85_v26 = vmul.f32 %v25_v6, %v25_v6  ;;  %v86_v27 = vmul.f32 %v26_v11, %v26_v11 }
   0x6   :  { %v33_v23 = vadd.f32 %v32_v17, %v30_v16  ;;  %v45_v24 = vadd.f32 %v44_v13, %v43_v18  ;;  %v87_v28 = vmul.f32 %v27_v15, %v27_v15  ;;  %v88_v29 = vadd.f32 %v82_v21, %v80_v14 }
   0x7   :  { %v98_v32 = vsel %vm40_vm0, %v81_v19, 0.0  ;;  %v99_v33 = vsel %vm40_vm0, %v83_v22, 0.0  ;;  %v90_v35 = vsel %vm31_vm1, %v86_v27, 0.0  ;;  %v101_v37 = vsel %vm40_vm0, %v85_v26, 0.0 }
   0x8   :  { %v34_v30 = vrot.slane %v33_v23, 4  ;;  %v48_v31 = vadd.f32 %v47_v20, %v45_v24  ;;  %v89_v34 = vadd.f32 %v88_v29, %v84_v25  ;;  %v100_v36 = vadd.f32 %v99_v33, %v98_v32 }
   0x9   :  { %v103_v40 = vsel %vm46_vm3, %v87_v28, 0.0  ;;  %v59_v46 = vunpack.c.l.s4 %v142_v45  ;;  %v62_v56 = vshrl.u32 %v14_v0, 7 }
   0xa   :  { %v35_v38 = vadd.f32 %v34_v30, %v33_v23  ;;  %v49_v39 = vrot.slane %v48_v31, 4  ;;  %v91_v41 = vadd.f32 %v90_v35, %v89_v34  ;;  %v102_v42 = vadd.f32 %v101_v37, %v100_v36  ;;  %v28_v9 = vld [vmem:[%s223_s1] sm:$0x3] }
   0xb   :  { %v60_v55 = vunpack.c.0.s8 %v59_v46  ;;  %v79_v14 = vld [vmem:[%s224_s2] sm:$0x3] }
   0xc   :  { %v36_v43 = vrot.slane %v35_v38, 2  ;;  %v50_v44 = vadd.f32 %v49_v39, %v48_v31  ;;  %v92_v47 = vrot.slane %v91_v41, 4  ;;  %v104_v48 = vadd.f32 %v103_v40, %v102_v42 }
   0xd   :  { %v63_v1 = vsub.s32 %v60_v55, %v62_v56 }
   0xe   :  { %v37_v49 = vadd.f32 %v36_v43, %v35_v38  ;;  %v51_v50 = vrot.slane %v50_v44, 2  ;;  %v93_v51 = vadd.f32 %v92_v47, %v91_v41  ;;  %v105_v52 = vrot.slane %v104_v48, 4 }
  0x10   :  { %v38_v53 = vrot.slane %v37_v49, 1  ;;  %v52_v54 = vadd.f32 %v51_v50, %v50_v44  ;;  %v94_v57 = vrot.slane %v93_v51, 2  ;;  %v106_v58 = vadd.f32 %v105_v52, %v104_v48 }
  0x12   :  { %v39_v59 = vadd.f32 %v38_v53, %v37_v49  ;;  %v53_v60 = vrot.slane %v52_v54, 1  ;;  %v95_v61 = vadd.f32 %v94_v57, %v93_v51  ;;  %v107_v62 = vrot.slane %v106_v58, 2 }
  0x14   :  { %v54_v63 = vadd.f32 %v53_v60, %v52_v54  ;;  %v96_v2 = vrot.slane %v95_v61, 1  ;;  %v108_v3 = vadd.f32 %v107_v62, %v106_v58 }
  0x16   :  { %v57_v5 = vcombine.low %v39_v59, %v54_v63  ;;  %v97_v6 = vadd.f32 %v96_v2, %v95_v61  ;;  %v109_v7 = vrot.slane %v108_v3, 1 }
  0x18   :  { %v64_v8 = vrot.slane %v57_v5, %v63_v1  ;;  %v110_v10 = vadd.f32 %v109_v7, %v108_v3 }
  0x1a   :  { %v71_v0 = vrot.slane %v64_v8, %v63_v1  ;;  %v113_v11 = vcombine.low %v97_v6, %v110_v10 }
  0x1c   :  { %v73_v12 = vadd.f32 %v71_v0, %v28_v9  ;;  %v120_v13 = vrot.slane %v113_v11, %v63_v1 }
  0x1e   :  { %78 = vst.msk [vmem:[%s223_s1] sm:$0x3] %vm167_vm2, %v73_v12  ;;  %v127_v15 = vrot.slane %v120_v13, %v63_v1 }
  0x20   :  { %v129_v16 = vadd.f32 %v127_v15, %v79_v14 }
  0x22   :  { %130 = vst.msk [vmem:[%s224_s2] sm:$0x3] %vm167_vm2, %v129_v16 }

// kernel: decoder_forward.12
= control target key start
LH: loop header
LB: loop body
LE: loop exit
PB: predicated region body
PF: predicated region fallthrough
CT: control target
= control target key end

     0   :  { %vm932_vm0 = vcmask 523264   ;;  %s2100_s1 = inlined_call_operand.vmem [shape: bf16[576,512], index: 1, kind: input, shape index: {}]   ;;  %s2101_s0 = inlined_call_operand.vmem [shape: bf16[16,576], index: 0, kind: input, shape index: {}]   ;;  %s2102_s2 = inlined_call_operand.vmem [shape: f32[1,512], index: 2, kind: input, shape index: {}]   ;;  %s2103_s3 = inlined_call_operand.vmem [shape: f32[16,512], index: 3, kind: output, shape index: {}]  }
   0x1   :  { %v1382_v0 = vld [vmem:[%s2100_s1 + $0x4] ss:$16 sps:$4 sm:$0xff]   ;;  %v1384_v1 = vld [vmem:[%s2100_s1 + $0xc] ss:$16 sps:$4 sm:$0xff]   ;;  %v1386_v2 = vld [vmem:[%s2100_s1] ss:$16 sps:$4 sm:$0xff]  }
   0x2   :  { %936 = vmatprep.subr.bf16.mxu0 %v1382_v0  ;;  %v1387_v3 = vld [vmem:[%s2100_s1 + $0x8] ss:$16 sps:$4 sm:$0xff]   ;;  %1065 = vmatprep.subr.bf16.mxu1 %v1384_v1  ;;  %v1388_v4 = vld [vmem:[%s2100_s1 + $0x24] ss:$16 sps:$4 sm:$0xff]   ;;  %v1390_v5 = vld [vmem:[%s2100_s1 + $0x2c] ss:$16 sps:$4 sm:$0xff]  }
   0x3   :  { %937 = vmatpush1.bf16.msra.mxu0 %v1386_v2  ;;  %1066 = vmatpush1.bf16.msra.mxu1 %v1387_v3  ;;  %v1392_v6 = vld [vmem:[%s2100_s1 + $0x20] ss:$16 sps:$4 sm:$0xff]   ;;  %v1393_v7 = vld [vmem:[%s2100_s1 + $0x28] ss:$16 sps:$4 sm:$0xff]   ;;  %v1394_v8 = vld [vmem:[%s2100_s1 + $0x44] ss:$16 sps:$4 sm:$0xff]  }
   0x4   :  { %938 = vmatprep.subr.bf16.mxu0 %v1388_v4  ;;  %1067 = vmatprep.subr.bf16.mxu1 %v1390_v5  ;;  %v1396_v9 = vld [vmem:[%s2100_s1 + $0x4c] ss:$16 sps:$4 sm:$0xff]   ;;  %v1398_v10 = vld [vmem:[%s2100_s1 + $0x40] ss:$16 sps:$4 sm:$0xff]   ;;  %v1399_v11 = vld [vmem:[%s2100_s1 + $0x48] ss:$16 sps:$4 sm:$0xff]  }
   0x5   :  { %v1400_v12 = vld [vmem:[%s2100_s1 + $0x64] ss:$16 sps:$4 sm:$0xff]   ;;  %v1402_v13 = vld [vmem:[%s2100_s1 + $0x6c] ss:$16 sps:$4 sm:$0xff]   ;;  %v1404_v14 = vld [vmem:[%s2100_s1 + $0x60] ss:$16 sps:$4 sm:$0xff]  }
   0x6   :  { %v1405_v15 = vld [vmem:[%s2100_s1 + $0x68] ss:$16 sps:$4 sm:$0xff]   ;;  %v1406_v16 = vld [vmem:[%s2100_s1 + $0x84] ss:$16 sps:$4 sm:$0xff]   ;;  %v1408_v17 = vld [vmem:[%s2100_s1 + $0x8c] ss:$16 sps:$4 sm:$0xff]  }
   0x7   :  { %939 = vmatpush1.bf16.msra.mxu0 %v1392_v6  ;;  %1068 = vmatpush1.bf16.msra.mxu1 %v1393_v7  ;;  %v1410_v18 = vld [vmem:[%s2100_s1 + $0x80] ss:$16 sps:$4 sm:$0xff]   ;;  %v1411_v19 = vld [vmem:[%s2100_s1 + $0x88] ss:$16 sps:$4 sm:$0xff]   ;;  %v1412_v20 = vld [vmem:[%s2100_s1 + $0xa4] ss:$16 sps:$4 sm:$0xff]  }
   0x8   :  { %940 = vmatprep.subr.bf16.mxu0 %v1394_v8  ;;  %1069 = vmatprep.subr.bf16.mxu1 %v1396_v9  ;;  %v1414_v21 = vld [vmem:[%s2100_s1 + $0xac] ss:$16 sps:$4 sm:$0xff]   ;;  %v1416_v22 = vld [vmem:[%s2100_s1 + $0xa0] ss:$16 sps:$4 sm:$0xff]   ;;  %v1417_v23 = vld [vmem:[%s2100_s1 + $0xa8] ss:$16 sps:$4 sm:$0xff]  }
   0x9   :  { %v1418_v24 = vld [vmem:[%s2100_s1 + $0xc4] ss:$16 sps:$4 sm:$0xff]   ;;  %v1420_v25 = vld [vmem:[%s2100_s1 + $0xcc] ss:$16 sps:$4 sm:$0xff]   ;;  %v1422_v26 = vld [vmem:[%s2100_s1 + $0xc0] ss:$16 sps:$4 sm:$0xff]  }
   0xa   :  { %v1423_v27 = vld [vmem:[%s2100_s1 + $0xc8] ss:$16 sps:$4 sm:$0xff]   ;;  %v1424_v28 = vld [vmem:[%s2100_s1 + $0xe4] ss:$16 sps:$4 sm:$0xff]   ;;  %v1426_v29 = vld [vmem:[%s2100_s1 + $0xec] ss:$16 sps:$4 sm:$0xff]  }
   0xb   :  { %941 = vmatpush1.bf16.msra.mxu0 %v1398_v10  ;;  %1070 = vmatpush1.bf16.msra.mxu1 %v1399_v11  ;;  %v1428_v30 = vld [vmem:[%s2100_s1 + $0xe0] ss:$16 sps:$4 sm:$0xff]   ;;  %v1429_v31 = vld [vmem:[%s2100_s1 + $0xe8] ss:$16 sps:$4 sm:$0xff]   ;;  %v1430_v32 = vld [vmem:[%s2100_s1 + $0x104] ss:$16 sps:$4 sm:$0xff]  }
   0xc   :  { %942 = vmatprep.subr.bf16.mxu0 %v1400_v12  ;;  %1071 = vmatprep.subr.bf16.mxu1 %v1402_v13  ;;  %v1432_v33 = vld [vmem:[%s2100_s1 + $0x10c] ss:$16 sps:$4 sm:$0xff]   ;;  %v1434_v34 = vld [vmem:[%s2100_s1 + $0x100] ss:$16 sps:$4 sm:$0xff]   ;;  %v1435_v35 = vld [vmem:[%s2100_s1 + $0x108] ss:$16 sps:$4 sm:$0xff]  }
   0xd   :  { %v1436_v36 = vld [vmem:[%s2100_s1 + $0x124] ss:$16 sps:$4 sm:$0xff]   ;;  %v1438_v37 = vld [vmem:[%s2100_s1 + $0x12c] ss:$16 sps:$4 sm:$0xff]   ;;  %v1440_v38 = vld [vmem:[%s2100_s1 + $0x120] ss:$16 sps:$4 sm:$0xff]  }
   0xe   :  { %v1441_v39 = vld [vmem:[%s2100_s1 + $0x128] ss:$16 sps:$4 sm:$0xff]   ;;  %v1442_v40 = vld [vmem:[%s2100_s1 + $0x144] ss:$16 sps:$4 sm:$0xff]   ;;  %v1444_v41 = vld [vmem:[%s2100_s1 + $0x14c] ss:$16 sps:$4 sm:$0xff]  }
   0xf   :  { %943 = vmatpush1.bf16.msra.mxu0 %v1404_v14  ;;  %1072 = vmatpush1.bf16.msra.mxu1 %v1405_v15  ;;  %v1446_v42 = vld [vmem:[%s2100_s1 + $0x140] ss:$16 sps:$4 sm:$0xff]   ;;  %v1447_v43 = vld [vmem:[%s2100_s1 + $0x148] ss:$16 sps:$4 sm:$0xff]   ;;  %v1448_v44 = vld [vmem:[%s2100_s1 + $0x164] ss:$16 sps:$4 sm:$0xff]  }
  0x10   :  { %944 = vmatprep.subr.bf16.mxu0 %v1406_v16  ;;  %1073 = vmatprep.subr.bf16.mxu1 %v1408_v17  ;;  %v1450_v45 = vld [vmem:[%s2100_s1 + $0x16c] ss:$16 sps:$4 sm:$0xff]   ;;  %v1452_v46 = vld [vmem:[%s2100_s1 + $0x160] ss:$16 sps:$4 sm:$0xff]   ;;  %v1453_v47 = vld [vmem:[%s2100_s1 + $0x168] ss:$16 sps:$4 sm:$0xff]  }
  0x11   :  { %v1480_v48 = vld [vmem:[%s2101_s0 + $0x4] ss:$20 sps:$4 sm:$0xff]   ;;  %v1456_v50 = vld [vmem:[%s2100_s1 + $0x18c] ss:$16 sps:$4 sm:$0xff]   ;;  %v1458_v51 = vld [vmem:[%s2100_s1 + $0x180] ss:$16 sps:$4 sm:$0xff]  }
  0x12   :  { %v1454_v49 = vld [vmem:[%s2100_s1 + $0x184] ss:$16 sps:$4 sm:$0xff]   ;;  %968 = vmatprep.mubr.bf16.mxu0 %v1480_v48  ;;  %1097 = vmatprep.mubr.bf16.mxu1 %v1480_v48  ;;  %v1459_v52 = vld [vmem:[%s2100_s1 + $0x188] ss:$16 sps:$4 sm:$0xff]   ;;  %v1462_v54 = vld [vmem:[%s2100_s1 + $0x1ac] ss:$16 sps:$4 sm:$0xff]  }
  0x13   :  { %945 = vmatpush1.bf16.msra.mxu0 %v1410_v18  ;;  %1074 = vmatpush1.bf16.msra.mxu1 %v1411_v19  ;;  %v1460_v53 = vld [vmem:[%s2100_s1 + $0x1a4] ss:$16 sps:$4 sm:$0xff]   ;;  %v1464_v55 = vld [vmem:[%s2100_s1 + $0x1a0] ss:$16 sps:$4 sm:$0xff]   ;;  %v1465_v56 = vld [vmem:[%s2100_s1 + $0x1a8] ss:$16 sps:$4 sm:$0xff]  }
  0x14   :  { %946 = vmatprep.subr.bf16.mxu0 %v1412_v20  ;;  %1075 = vmatprep.subr.bf16.mxu1 %v1414_v21  ;;  %v1466_v57 = vld [vmem:[%s2100_s1 + $0x1c4] ss:$16 sps:$4 sm:$0xff]   ;;  %v1468_v58 = vld [vmem:[%s2100_s1 + $0x1cc] ss:$16 sps:$4 sm:$0xff]   ;;  %v1470_v59 = vld [vmem:[%s2100_s1 + $0x1c0] ss:$16 sps:$4 sm:$0xff]  }
  0x15   :  { %v1471_v60 = vld [vmem:[%s2100_s1 + $0x1c8] ss:$16 sps:$4 sm:$0xff]   ;;  %v1472_v61 = vld [vmem:[%s2100_s1 + $0x1e4] ss:$16 sps:$4 sm:$0xff]   ;;  %v1474_v62 = vld [vmem:[%s2100_s1 + $0x1ec] ss:$16 sps:$4 sm:$0xff]  }
  0x16   :  { %v1476_v63 = vld [vmem:[%s2100_s1 + $0x1e0] ss:$16 sps:$4 sm:$0xff]   ;;  %v1477_v0 = vld [vmem:[%s2100_s1 + $0x1e8] ss:$16 sps:$4 sm:$0xff]   ;;  %v1483_v1 = vld [vmem:[%s2100_s1 + $0x204] ss:$16 sps:$4 sm:$0xff]  }
  0x17   :  { %947 = vmatpush1.bf16.msra.mxu0 %v1416_v22  ;;  %1076 = vmatpush1.bf16.msra.mxu1 %v1417_v23  ;;  %v1486_v2 = vld [vmem:[%s2100_s1 + $0x20c] ss:$16 sps:$4 sm:$0xff]   ;;  %v1478_v3 = vld [vmem:[%s2101_s0] ss:$20 sps:$4 sm:$0xff]   ;;  %v1484_v5 = vld [vmem:[%s2100_s1 + $0x208] ss:$16 sps:$4 sm:$0xff]  }
  0x18   :  { %948 = vmatprep.subr.bf16.mxu0 %v1418_v24  ;;  %1077 = vmatprep.subr.bf16.mxu1 %v1420_v25  ;;  %v1481_v4 = vld [vmem:[%s2100_s1 + $0x200] ss:$16 sps:$4 sm:$0xff]   ;;  %v1489_v6 = vld [vmem:[%s2100_s1 + $0x224] ss:$16 sps:$4 sm:$0xff]   ;;  %v1492_v7 = vld [vmem:[%s2100_s1 + $0x22c] ss:$16 sps:$4 sm:$0xff]  }
  0x19   :  { %v1487_v8 = vld [vmem:[%s2100_s1 + $0x220] ss:$16 sps:$4 sm:$0xff]   ;;  %v1490_v9 = vld [vmem:[%s2100_s1 + $0x228] ss:$16 sps:$4 sm:$0xff]   ;;  %v1495_v10 = vld [vmem:[%s2100_s1 + $0x244] ss:$16 sps:$4 sm:$0xff]  }
  0x1a   :  { %v1498_v11 = vld [vmem:[%s2100_s1 + $0x24c] ss:$16 sps:$4 sm:$0xff]   ;;  %v1493_v12 = vld [vmem:[%s2100_s1 + $0x240] ss:$16 sps:$4 sm:$0xff]   ;;  %v1496_v13 = vld [vmem:[%s2100_s1 + $0x248] ss:$16 sps:$4 sm:$0xff]  }
  0x1b   :  { %949 = vmatpush1.bf16.msra.mxu0 %v1422_v26  ;;  %1078 = vmatpush1.bf16.msra.mxu1 %v1423_v27  ;;  %v1501_v14 = vld [vmem:[%s2100_s1 + $0x264] ss:$16 sps:$4 sm:$0xff]   ;;  %v1504_v15 = vld [vmem:[%s2100_s1 + $0x26c] ss:$16 sps:$4 sm:$0xff]   ;;  %v1499_v16 = vld [vmem:[%s2100_s1 + $0x260] ss:$16 sps:$4 sm:$0xff]  }
  0x1c   :  { %950 = vmatprep.subr.bf16.mxu0 %v1424_v28  ;;  %1079 = vmatprep.subr.bf16.mxu1 %v1426_v29  ;;  %v1502_v17 = vld [vmem:[%s2100_s1 + $0x268] ss:$16 sps:$4 sm:$0xff]   ;;  %v1507_v18 = vld [vmem:[%s2100_s1 + $0x284] ss:$16 sps:$4 sm:$0xff]   ;;  %v1510_v19 = vld [vmem:[%s2100_s1 + $0x28c] ss:$16 sps:$4 sm:$0xff]  }
  0x1d   :  { %v1505_v20 = vld [vmem:[%s2100_s1 + $0x280] ss:$16 sps:$4 sm:$0xff]   ;;  %v1508_v21 = vld [vmem:[%s2100_s1 + $0x288] ss:$16 sps:$4 sm:$0xff]   ;;  %v1513_v22 = vld [vmem:[%s2100_s1 + $0x2a4] ss:$16 sps:$4 sm:$0xff]  }
  0x1e   :  { %v1516_v23 = vld [vmem:[%s2100_s1 + $0x2ac] ss:$16 sps:$4 sm:$0xff]   ;;  %v1511_v24 = vld [vmem:[%s2100_s1 + $0x2a0] ss:$16 sps:$4 sm:$0xff]   ;;  %v1514_v25 = vld [vmem:[%s2100_s1 + $0x2a8] ss:$16 sps:$4 sm:$0xff]  }
  0x1f   :  { %951 = vmatpush1.bf16.msra.mxu0 %v1428_v30  ;;  %1080 = vmatpush1.bf16.msra.mxu1 %v1429_v31  ;;  %v1519_v26 = vld [vmem:[%s2100_s1 + $0x2c4] ss:$16 sps:$4 sm:$0xff]   ;;  %v1522_v27 = vld [vmem:[%s2100_s1 + $0x2cc] ss:$16 sps:$4 sm:$0xff]   ;;  %v1517_v28 = vld [vmem:[%s2100_s1 + $0x2c0] ss:$16 sps:$4 sm:$0xff]  }
  0x20   :  { %952 = vmatprep.subr.bf16.mxu0 %v1430_v32  ;;  %1081 = vmatprep.subr.bf16.mxu1 %v1432_v33  ;;  %v1520_v29 = vld [vmem:[%s2100_s1 + $0x2c8] ss:$16 sps:$4 sm:$0xff]   ;;  %v1579_v30 = vld [vmem:[%s2101_s0 + $0xc] ss:$20 sps:$4 sm:$0xff]   ;;  %v1525_v31 = vld [vmem:[%s2100_s1 + $0x2e4] ss:$16 sps:$4 sm:$0xff]  }
  0x21   :  { %v1528_v32 = vld [vmem:[%s2100_s1 + $0x2ec] ss:$16 sps:$4 sm:$0xff]   ;;  %v1523_v33 = vld [vmem:[%s2100_s1 + $0x2e0] ss:$16 sps:$4 sm:$0xff]  }
  0x22   :  { %v1552_v48 = vld [vmem:[%s2100_s1 + $0x36c] ss:$16 sps:$4 sm:$0xff]  }
  0x23   :  { %953 = vmatpush1.bf16.msra.mxu0 %v1434_v34  ;;  %1082 = vmatpush1.bf16.msra.mxu1 %v1435_v35  ;;  %v1526_v34 = vld [vmem:[%s2100_s1 + $0x2e8] ss:$16 sps:$4 sm:$0xff]   ;;  %v1531_v35 = vld [vmem:[%s2100_s1 + $0x304] ss:$16 sps:$4 sm:$0xff]  }
  0x24   :  { %954 = vmatprep.subr.bf16.mxu0 %v1436_v36  ;;  %1083 = vmatprep.subr.bf16.mxu1 %v1438_v37  ;;  %v1534_v36 = vld [vmem:[%s2100_s1 + $0x30c] ss:$16 sps:$4 sm:$0xff]   ;;  %v1529_v37 = vld [vmem:[%s2100_s1 + $0x300] ss:$16 sps:$4 sm:$0xff]  }
  0x27   :  { %955 = vmatpush1.bf16.msra.mxu0 %v1440_v38  ;;  %1084 = vmatpush1.bf16.msra.mxu1 %v1441_v39  ;;  %v1532_v38 = vld [vmem:[%s2100_s1 + $0x308] ss:$16 sps:$4 sm:$0xff]   ;;  %v1537_v39 = vld [vmem:[%s2100_s1 + $0x324] ss:$16 sps:$4 sm:$0xff]  }
  0x28   :  { %956 = vmatprep.subr.bf16.mxu0 %v1442_v40  ;;  %1085 = vmatprep.subr.bf16.mxu1 %v1444_v41  ;;  %v1540_v40 = vld [vmem:[%s2100_s1 + $0x32c] ss:$16 sps:$4 sm:$0xff]   ;;  %v1535_v41 = vld [vmem:[%s2100_s1 + $0x320] ss:$16 sps:$4 sm:$0xff]  }
  0x2b   :  { %957 = vmatpush1.bf16.msra.mxu0 %v1446_v42  ;;  %1086 = vmatpush1.bf16.msra.mxu1 %v1447_v43  ;;  %v1538_v42 = vld [vmem:[%s2100_s1 + $0x328] ss:$16 sps:$4 sm:$0xff]   ;;  %v1543_v43 = vld [vmem:[%s2100_s1 + $0x344] ss:$16 sps:$4 sm:$0xff]  }
  0x2c   :  { %958 = vmatprep.subr.bf16.mxu0 %v1448_v44  ;;  %1087 = vmatprep.subr.bf16.mxu1 %v1450_v45  ;;  %v1546_v44 = vld [vmem:[%s2100_s1 + $0x34c] ss:$16 sps:$4 sm:$0xff]   ;;  %v1541_v45 = vld [vmem:[%s2100_s1 + $0x340] ss:$16 sps:$4 sm:$0xff]  }
  0x2f   :  { %959 = vmatpush1.bf16.msra.mxu0 %v1452_v46  ;;  %1088 = vmatpush1.bf16.msra.mxu1 %v1453_v47  ;;  %v1544_v46 = vld [vmem:[%s2100_s1 + $0x348] ss:$16 sps:$4 sm:$0xff]   ;;  %v1549_v47 = vld [vmem:[%s2100_s1 + $0x364] ss:$16 sps:$4 sm:$0xff]  }
  0x30   :  { %960 = vmatprep.subr.bf16.mxu0 %v1454_v49  ;;  %1089 = vmatprep.subr.bf16.mxu1 %v1456_v50  ;;  %v1547_v49 = vld [vmem:[%s2100_s1 + $0x360] ss:$16 sps:$4 sm:$0xff]   ;;  %v1550_v50 = vld [vmem:[%s2100_s1 + $0x368] ss:$16 sps:$4 sm:$0xff]  }
  0x33   :  { %961 = vmatpush1.bf16.msra.mxu0 %v1458_v51  ;;  %1090 = vmatpush1.bf16.msra.mxu1 %v1459_v52  ;;  %v1555_v51 = vld [vmem:[%s2100_s1 + $0x384] ss:$16 sps:$4 sm:$0xff]   ;;  %v1558_v52 = vld [vmem:[%s2100_s1 + $0x38c] ss:$16 sps:$4 sm:$0xff]  }
  0x34   :  { %962 = vmatprep.subr.bf16.mxu0 %v1460_v53  ;;  %1091 = vmatprep.subr.bf16.mxu1 %v1462_v54  ;;  %v1553_v53 = vld [vmem:[%s2100_s1 + $0x380] ss:$16 sps:$4 sm:$0xff]   ;;  %v1556_v54 = vld [vmem:[%s2100_s1 + $0x388] ss:$16 sps:$4 sm:$0xff]  }
  0x37   :  { %963 = vmatpush1.bf16.msra.mxu0 %v1464_v55  ;;  %1092 = vmatpush1.bf16.msra.mxu1 %v1465_v56  ;;  %v1561_v55 = vld [vmem:[%s2100_s1 + $0x3a4] ss:$16 sps:$4 sm:$0xff]   ;;  %v1564_v56 = vld [vmem:[%s2100_s1 + $0x3ac] ss:$16 sps:$4 sm:$0xff]  }
  0x38   :  { %964 = vmatprep.subr.bf16.mxu0 %v1466_v57  ;;  %1093 = vmatprep.subr.bf16.mxu1 %v1468_v58  ;;  %v1559_v57 = vld [vmem:[%s2100_s1 + $0x3a0] ss:$16 sps:$4 sm:$0xff]   ;;  %v1562_v58 = vld [vmem:[%s2100_s1 + $0x3a8] ss:$16 sps:$4 sm:$0xff]  }
  0x3b   :  { %965 = vmatpush1.bf16.msra.mxu0 %v1470_v59  ;;  %1094 = vmatpush1.bf16.msra.mxu1 %v1471_v60  ;;  %v1567_v59 = vld [vmem:[%s2100_s1 + $0x3c4] ss:$16 sps:$4 sm:$0xff]   ;;  %v1570_v60 = vld [vmem:[%s2100_s1 + $0x3cc] ss:$16 sps:$4 sm:$0xff]  }
  0x3c   :  { %966 = vmatprep.subr.bf16.mxu0 %v1472_v61  ;;  %1095 = vmatprep.subr.bf16.mxu1 %v1474_v62  ;;  %v1565_v61 = vld [vmem:[%s2100_s1 + $0x3c0] ss:$16 sps:$4 sm:$0xff]   ;;  %v1568_v62 = vld [vmem:[%s2100_s1 + $0x3c8] ss:$16 sps:$4 sm:$0xff]  }
  0x3f   :  { %967 = vmatpush1.bf16.msra.mxu0 %v1476_v63  ;;  %1096 = vmatpush1.bf16.msra.mxu1 %v1477_v0  ;;  %v1573_v63 = vld [vmem:[%s2100_s1 + $0x3e4] ss:$16 sps:$4 sm:$0xff]   ;;  %v1576_v0 = vld [vmem:[%s2100_s1 + $0x3ec] ss:$16 sps:$4 sm:$0xff]  }
  0x40   :  { %979 = vmatprep.subr.bf16.mxu0 %v1483_v1  ;;  %1108 = vmatprep.subr.bf16.mxu1 %v1486_v2  ;;  %v1571_v1 = vld [vmem:[%s2100_s1 + $0x3e0] ss:$16 sps:$4 sm:$0xff]   ;;  %v1574_v2 = vld [vmem:[%s2100_s1 + $0x3e8] ss:$16 sps:$4 sm:$0xff]  }
  0x42   :  { %969 = vmatmul.mubr.bf16.vlgmr.msra.gmra.mrb[0].mxu0 %v1478_v3  ;;  %1098 = vmatmul.mubr.bf16.vlgmr.msra.gmra.mrb[0].mxu1 %v1478_v3  ;;  %v1582_v3 = vld [vmem:[%s2100_s1 + $0x404] ss:$16 sps:$4 sm:$0xff]  }
  0x43   :  { %980 = vmatpush1.bf16.msra.mxu0 %v1481_v4  ;;  %1109 = vmatpush1.bf16.msra.mxu1 %v1484_v5  ;;  %v1585_v4 = vld [vmem:[%s2100_s1 + $0x40c] ss:$16 sps:$4 sm:$0xff]  }
  0x44   :  { %981 = vmatprep.subr.bf16.mxu0 %v1489_v6  ;;  %1110 = vmatprep.subr.bf16.mxu1 %v1492_v7  ;;  %v1577_v5 = vld [vmem:[%s2101_s0 + $0x8] ss:$20 sps:$4 sm:$0xff]   ;;  %v1580_v6 = vld [vmem:[%s2100_s1 + $0x400] ss:$16 sps:$4 sm:$0xff]  }
  0x45   :  { %1011 = vmatprep.mubr.bf16.mxu0 %v1579_v30  ;;  %1140 = vmatprep.mubr.bf16.mxu1 %v1579_v30  ;;  %v1583_v7 = vld [vmem:[%s2100_s1 + $0x408] ss:$16 sps:$4 sm:$0xff]  }
  0x47   :  { %982 = vmatpush1.bf16.msra.mxu0 %v1487_v8  ;;  %1111 = vmatpush1.bf16.msra.mxu1 %v1490_v9  ;;  %v1588_v8 = vld [vmem:[%s2100_s1 + $0x424] ss:$16 sps:$4 sm:$0xff]   ;;  %v1591_v9 = vld [vmem:[%s2100_s1 + $0x42c] ss:$16 sps:$4 sm:$0xff]  }
  0x48   :  { %983 = vmatprep.subr.bf16.mxu0 %v1495_v10  ;;  %1112 = vmatprep.subr.bf16.mxu1 %v1498_v11  ;;  %v1586_v10 = vld [vmem:[%s2100_s1 + $0x420] ss:$16 sps:$4 sm:$0xff]   ;;  %v1589_v11 = vld [vmem:[%s2100_s1 + $0x428] ss:$16 sps:$4 sm:$0xff]  }
  0x4b   :  { %984 = vmatpush1.bf16.msra.mxu0 %v1493_v12  ;;  %1113 = vmatpush1.bf16.msra.mxu1 %v1496_v13  ;;  %v1594_v12 = vld [vmem:[%s2100_s1 + $0x444] ss:$16 sps:$4 sm:$0xff]   ;;  %v1597_v13 = vld [vmem:[%s2100_s1 + $0x44c] ss:$16 sps:$4 sm:$0xff]  }
  0x4c   :  { %985 = vmatprep.subr.bf16.mxu0 %v1501_v14  ;;  %1114 = vmatprep.subr.bf16.mxu1 %v1504_v15  ;;  %v1605_v14 = vmov 0   ;;  %v1592_v15 = vld [vmem:[%s2100_s1 + $0x440] ss:$16 sps:$4 sm:$0xff]  }
  0x4f   :  { %986 = vmatpush1.bf16.msra.mxu0 %v1499_v16  ;;  %1115 = vmatpush1.bf16.msra.mxu1 %v1502_v17  ;;  %v1595_v16 = vld [vmem:[%s2100_s1 + $0x448] ss:$16 sps:$4 sm:$0xff]   ;;  %v1600_v17 = vld [vmem:[%s2100_s1 + $0x464] ss:$16 sps:$4 sm:$0xff]  }
  0x50   :  { %987 = vmatprep.subr.bf16.mxu0 %v1507_v18  ;;  %1116 = vmatprep.subr.bf16.mxu1 %v1510_v19  ;;  %v1603_v18 = vld [vmem:[%s2100_s1 + $0x46c] ss:$16 sps:$4 sm:$0xff]   ;;  %v1598_v19 = vld [vmem:[%s2100_s1 + $0x460] ss:$16 sps:$4 sm:$0xff]  }
  0x53   :  { %988 = vmatpush1.bf16.msra.mxu0 %v1505_v20  ;;  %1117 = vmatpush1.bf16.msra.mxu1 %v1508_v21  ;;  %v1601_v20 = vld [vmem:[%s2100_s1 + $0x468] ss:$16 sps:$4 sm:$0xff]   ;;  %v1604_v21 = vld [vmem:[%s2101_s0 + $0x10] ss:$20 sps:$4 sm:$0xff]  }
  0x54   :  { %989 = vmatprep.subr.bf16.mxu0 %v1513_v22  ;;  %1118 = vmatprep.subr.bf16.mxu1 %v1516_v23  ;;  %v167_v22 = vlaneseq }
  0x56   :  { %v168_v23 = vshrl.u32 %v167_v22, 7 }
  0x57   :  { %990 = vmatpush1.bf16.msra.mxu0 %v1511_v24  ;;  %1119 = vmatpush1.bf16.msra.mxu1 %v1514_v25 }
  0x58   :  { %991 = vmatprep.subr.bf16.mxu0 %v1519_v26  ;;  %1120 = vmatprep.subr.bf16.mxu1 %v1522_v27  ;;  %v169_v24 = vsub.s32 0, %v168_v23  ;;  %v177_v25 = vsub.s32 2, %v168_v23  ;;  %v165_v26 = vld [vmem:[%s2102_s2] sm:$0xf]  ;;  %v173_v27 = vsub.s32 1, %v168_v23 }
  0x5a   :  { %v178_v30 = vrot.slane %v165_v26, %v177_v25 }
  0x5b   :  { %992 = vmatpush1.bf16.msra.mxu0 %v1517_v28  ;;  %1121 = vmatpush1.bf16.msra.mxu1 %v1520_v29  ;;  %v181_v28 = vsub.s32 3, %v168_v23  ;;  %v170_v29 = vrot.slane %v165_v26, %v169_v24 }
  0x5c   :  { %993 = vmatprep.subr.bf16.mxu0 %v1525_v31  ;;  %1122 = vmatprep.subr.bf16.mxu1 %v1528_v32  ;;  %v174_v31 = vrot.slane %v165_v26, %v173_v27 }
  0x5d   :  { %v182_v32 = vrot.slane %v165_v26, %v181_v28 }
  0x5f   :  { %994 = vmatpush1.bf16.msra.mxu0 %v1523_v33  ;;  %1123 = vmatpush1.bf16.msra.mxu1 %v1526_v34 }
  0x60   :  { %995 = vmatprep.subr.bf16.mxu0 %v1531_v35  ;;  %1124 = vmatprep.subr.bf16.mxu1 %v1534_v36 }
  0x63   :  { %996 = vmatpush1.bf16.msra.mxu0 %v1529_v37  ;;  %1125 = vmatpush1.bf16.msra.mxu1 %v1532_v38 }
  0x64   :  { %997 = vmatprep.subr.bf16.mxu0 %v1537_v39  ;;  %1126 = vmatprep.subr.bf16.mxu1 %v1540_v40 }
  0x67   :  { %998 = vmatpush1.bf16.msra.mxu0 %v1535_v41  ;;  %1127 = vmatpush1.bf16.msra.mxu1 %v1538_v42 }
  0x68   :  { %999 = vmatprep.subr.bf16.mxu0 %v1543_v43  ;;  %1128 = vmatprep.subr.bf16.mxu1 %v1546_v44 }
  0x6b   :  { %1000 = vmatpush1.bf16.msra.mxu0 %v1541_v45  ;;  %1129 = vmatpush1.bf16.msra.mxu1 %v1544_v46 }
  0x6c   :  { %1001 = vmatprep.subr.bf16.mxu0 %v1549_v47  ;;  %1130 = vmatprep.subr.bf16.mxu1 %v1552_v48 }
  0x6f   :  { %1002 = vmatpush1.bf16.msra.mxu0 %v1547_v49  ;;  %1131 = vmatpush1.bf16.msra.mxu1 %v1550_v50 }
  0x70   :  { %1003 = vmatprep.subr.bf16.mxu0 %v1555_v51  ;;  %1132 = vmatprep.subr.bf16.mxu1 %v1558_v52 }
  0x73   :  { %1004 = vmatpush1.bf16.msra.mxu0 %v1553_v53  ;;  %1133 = vmatpush1.bf16.msra.mxu1 %v1556_v54 }
  0x74   :  { %1005 = vmatprep.subr.bf16.mxu0 %v1561_v55  ;;  %1134 = vmatprep.subr.bf16.mxu1 %v1564_v56 }
  0x77   :  { %1006 = vmatpush1.bf16.msra.mxu0 %v1559_v57  ;;  %1135 = vmatpush1.bf16.msra.mxu1 %v1562_v58 }
  0x78   :  { %1007 = vmatprep.subr.bf16.mxu0 %v1567_v59  ;;  %1136 = vmatprep.subr.bf16.mxu1 %v1570_v60 }
  0x7b   :  { %1008 = vmatpush1.bf16.msra.mxu0 %v1565_v61  ;;  %1137 = vmatpush1.bf16.msra.mxu1 %v1568_v62 }
  0x7c   :  { %1009 = vmatprep.subr.bf16.mxu0 %v1573_v63  ;;  %1138 = vmatprep.subr.bf16.mxu1 %v1576_v0 }
  0x7f   :  { %1010 = vmatpush1.bf16.msra.mxu0 %v1571_v1  ;;  %1139 = vmatpush1.bf16.msra.mxu1 %v1574_v2 }
  0x80   :  { %1022 = vmatprep.subr.bf16.mxu0 %v1582_v3  ;;  %1151 = vmatprep.subr.bf16.mxu1 %v1585_v4 }
  0x82   :  { %1012 = vmatmul.mubr.bf16.vlgmr.msra.gmra.mrb[0].mxu0 %v1577_v5  ;;  %1141 = vmatmul.mubr.bf16.vlgmr.msra.gmra.mrb[0].mxu1 %v1577_v5 }
  0x83   :  { %1023 = vmatpush1.bf16.msra.mxu0 %v1580_v6  ;;  %1152 = vmatpush1.bf16.msra.mxu1 %v1583_v7 }
  0x84   :  { %1024 = vmatprep.subr.bf16.mxu0 %v1588_v8  ;;  %1153 = vmatprep.subr.bf16.mxu1 %v1591_v9 }
  0x85   :  { %1054 = vmatprep.mubr.bf16.mxu0 %v1605_v14  ;;  %1183 = vmatprep.mubr.bf16.mxu1 %v1605_v14 }
  0x87   :  { %1025 = vmatpush1.bf16.msra.mxu0 %v1586_v10  ;;  %1154 = vmatpush1.bf16.msra.mxu1 %v1589_v11 }
  0x88   :  { %1026 = vmatprep.subr.bf16.mxu0 %v1594_v12  ;;  %1155 = vmatprep.subr.bf16.mxu1 %v1597_v13 }
  0x8b   :  { %1027 = vmatpush1.bf16.msra.mxu0 %v1592_v15  ;;  %1156 = vmatpush1.bf16.msra.mxu1 %v1595_v16 }
  0x8c   :  { %1028 = vmatprep.subr.bf16.mxu0 %v1600_v17  ;;  %1157 = vmatprep.subr.bf16.mxu1 %v1603_v18 }
  0x8f   :  { %1029 = vmatpush1.bf16.msra.mxu0 %v1598_v19  ;;  %1158 = vmatpush1.bf16.msra.mxu1 %v1601_v20 }
  0x92   :  { %1355 = vmatmul.mubr.msk.bf16.vlgmr.msra.gmra.mrb[0].mxu0 %vm932_vm0, %v1604_v21  ;;  %1356 = vmatmul.mubr.msk.bf16.vlgmr.msra.gmra.mrb[0].mxu1 %vm932_vm0, %v1604_v21 }
 0x165   :  { %v1056_v33 = vpop.f32.mrb[0].mxu0  ;;  %v1185_v34 = vpop.f32.mrb[0].mxu1 }
 0x166   :  { %v1357_v35 = vadd.f32 %v1056_v33, %v170_v29  ;;  %v1361_v36 = vadd.f32 %v1185_v34, %v178_v30  ;;  %v1058_v37 = vpop.f32.mrb[1].mxu0  ;;  %v1187_v38 = vpop.f32.mrb[1].mxu1 }
 0x167   :  { %v1358_v39 = vadd.f32 %v1058_v37, %v174_v31  ;;  %v1362_v40 = vadd.f32 %v1187_v38, %v182_v32  ;;  %v1060_v41 = vpop.f32.mrb[2].mxu0  ;;  %v1189_v42 = vpop.f32.mrb[2].mxu1 }
 0x168   :  { %1194 = vst [vmem:[%s2103_s3] sm:$0xff] %v1357_v35  ;;  %1196 = vst [vmem:[%s2103_s3 + $0x10] sm:$0xff] %v1361_v36  ;;  %v1359_v43 = vadd.f32 %v1060_v41, %v170_v29  ;;  %v1363_v44 = vadd.f32 %v1189_v42, %v178_v30  ;;  %v1062_v45 = vpop.f32.mrb[3].mxu0  ;;  %v1191_v46 = vpop.f32.mrb[3].mxu1 }
 0x169   :  { %1195 = vst [vmem:[%s2103_s3 + $0x8] sm:$0xff] %v1358_v39  ;;  %1197 = vst [vmem:[%s2103_s3 + $0x18] sm:$0xff] %v1362_v40  ;;  %v1360_v47 = vadd.f32 %v1062_v45, %v174_v31  ;;  %v1364_v48 = vadd.f32 %v1191_v46, %v182_v32 }
 0x16a   :  { %1198 = vst [vmem:[%s2103_s3 + $0x20] sm:$0xff] %v1359_v43  ;;  %1200 = vst [vmem:[%s2103_s3 + $0x30] sm:$0xff] %v1363_v44 }
 0x16b   :  { %1199 = vst [vmem:[%s2103_s3 + $0x28] sm:$0xff] %v1360_v47  ;;  %1201 = vst [vmem:[%s2103_s3 + $0x38] sm:$0xff] %v1364_v48 }

// kernel: decoder_forward.14
= control target key start
LH: loop header
LB: loop body
LE: loop exit
PB: predicated region body
PF: predicated region fallthrough
CT: control target
= control target key end

     0   :  { %v24_v0 = vlaneseq  ;;  %vm94_vm0 = vcmask 1043456   ;;  %vm95_vm1 = vcmask 916484   ;;  %vm100_vm3 = vcmask 1042432   ;;  %s204_s1 = inlined_call_operand.vmem [shape: f32[1,240], index: 1, kind: input, shape index: {}]   ;;  %s205_s2 = inlined_call_operand.vmem [shape: f32[1,240], index: 2, kind: input, shape index: {}]   ;;  %s206_s0 = inlined_call_operand.vmem [shape: f32[30,240], index: 0, kind: input, shape index: {}]   ;;  %s207_s3 = inlined_call_operand.vmem [shape: bf16[30,240], index: 3, kind: output, shape index: {}]  }
   0x1   :  { %v22_v2 = vld [vmem:[%s204_s1] sm:$0x3]  ;;  %v15_v7 = vld [vmem:[%s206_s0 + $0x8] sm:$0xff]  ;;  %v16_v8 = vld [vmem:[%s206_s0 + $0x10] sm:$0xff]  ;;  %vm101_vm4 = vcmask 915460  }
   0x2   :  { %v25_v1 = vshrl.u32 %v24_v0, 7  ;;  %v42_v3 = vld [vmem:[%s205_s2] sm:$0x3]  ;;  %v17_v9 = vld [vmem:[%s206_s0 + $0x18] sm:$0xff]  ;;  %v19_v15 = vld [vmem:[%s206_s0 + $0x28] sm:$0xff] }
   0x3   :  { %v14_v4 = vld [vmem:[%s206_s0] sm:$0xff]  ;;  %v20_v16 = vld [vmem:[%s206_s0 + $0x30] sm:$0x3f]  ;;  %v21_v21 = vld [vmem:[%s206_s0 + $0x38] sm:$0x3f] }
   0x4   :  { %v26_v5 = vsub.s32 0, %v25_v1  ;;  %v30_v6 = vsub.s32 1, %v25_v1  ;;  %v18_v14 = vld [vmem:[%s206_s0 + $0x20] sm:$0xff]  ;;  %vm182_vm2 = vmor %vm95_vm1, %vm94_vm0 }
   0x5   :  { %vm102_vm5 = vmor %vm101_vm4, %vm100_vm3 }
   0x6   :  { %v27_v10 = vrot.slane %v22_v2, %v26_v5  ;;  %v31_v11 = vrot.slane %v22_v2, %v30_v6  ;;  %v47_v12 = vrot.slane %v42_v3, %v26_v5  ;;  %v51_v13 = vrot.slane %v42_v3, %v30_v6 }
   0x8   :  { %v34_v17 = vmul.f32 %v27_v10, %v14_v4  ;;  %v35_v18 = vmul.f32 %v31_v11, %v15_v7  ;;  %v36_v19 = vmul.f32 %v27_v10, %v16_v8  ;;  %v37_v20 = vmul.f32 %v31_v11, %v17_v9 }
   0x9   :  { %v38_v22 = vmul.f32 %v27_v10, %v18_v14  ;;  %v39_v23 = vmul.f32 %v31_v11, %v19_v15  ;;  %v40_v27 = vmul.f32 %v27_v10, %v20_v16  ;;  %v41_v29 = vmul.f32 %v31_v11, %v21_v21 }
   0xa   :  { %v54_v24 = vadd.f32 %v47_v12, %v34_v17  ;;  %v55_v25 = vadd.f32 %v51_v13, %v35_v18  ;;  %v56_v26 = vadd.f32 %v47_v12, %v36_v19  ;;  %v57_v28 = vadd.f32 %v51_v13, %v37_v20 }
   0xb   :  { %v58_v30 = vadd.f32 %v47_v12, %v38_v22  ;;  %v59_v31 = vadd.f32 %v51_v13, %v39_v23  ;;  %v60_v32 = vadd.f32 %v47_v12, %v40_v27  ;;  %v61_v33 = vadd.f32 %v51_v13, %v41_v29 }
   0xc   :  { %116 = vtanh.f32 %v54_v24 }
   0xd   :  { %118 = vtanh.f32 %v55_v25 }
   0xe   :  { %120 = vtanh.f32 %v56_v26 }
   0xf   :  { %122 = vtanh.f32 %v57_v28 }
  0x10   :  { %124 = vtanh.f32 %v58_v30 }
  0x11   :  { %126 = vtanh.f32 %v59_v31 }
  0x12   :  { %128 = vtanh.f32 %v60_v32 }
  0x13   :  { %130 = vtanh.f32 %v61_v33 }
  0x16   :  { %v117_v34 = vpop.eup %116 }
  0x17   :  { %v119_v35 = vpop.eup %118 }
  0x18   :  { %v121_v37 = vpop.eup %120  ;;  %v112_v38 = vpack.c.bf16 %v119_v35, %v117_v34 }
  0x19   :  { %v123_v39 = vpop.eup %122 }
  0x1a   :  { %v125_v40 = vpop.eup %124  ;;  %97 = vst.msk [vmem:[%s207_s3] sm:$0xff] %vm182_vm2, %v112_v38  ;;  %v113_v41 = vpack.c.bf16 %v123_v39, %v121_v37 }
  0x1b   :  { %v127_v42 = vpop.eup %126 }
  0x1c   :  { %v129_v43 = vpop.eup %128  ;;  %98 = vst.msk [vmem:[%s207_s3 + $0x8] sm:$0xff] %vm182_vm2, %v113_v41  ;;  %v114_v44 = vpack.c.bf16 %v127_v42, %v125_v40 }
  0x1d   :  { %v131_v45 = vpop.eup %130 }
  0x1e   :  { %99 = vst.msk [vmem:[%s207_s3 + $0x10] sm:$0xff] %vm182_vm2, %v114_v44  ;;  %v115_v46 = vpack.c.bf16 %v131_v45, %v129_v43 }
  0x20   :  { %103 = vst.msk [vmem:[%s207_s3 + $0x18] sm:$0x77] %vm102_vm5, %v115_v46 }

// kernel: decoder_forward.15
= control target key start
LH: loop header
LB: loop body
LE: loop exit
PB: predicated region body
PF: predicated region fallthrough
CT: control target
= control target key end

     0   :  { %vm497_vm0 = vcmask 261120   ;;  %vm672_vm1 = vcmask 523264   ;;  %s1207_s1 = inlined_call_operand.vmem [shape: bf16[544,192], index: 1, kind: input, shape index: {}]   ;;  %s1208_s0 = inlined_call_operand.vmem [shape: bf16[32,544], index: 0, kind: input, shape index: {}]   ;;  %s1209_s2 = inlined_call_operand.vmem [shape: f32[1,192], index: 2, kind: input, shape index: {}]   ;;  %s1210_s3 = inlined_call_operand.vmem [shape: f32[32,192], index: 3, kind: output, shape index: {}]  }
   0x1   :  { %v793_v0 = vld [vmem:[%s1207_s1 + $0x4] ss:$8 sps:$4 sm:$0xff]   ;;  %v797_v2 = vld [vmem:[%s1207_s1] ss:$8 sps:$4 sm:$0xff]   ;;  %v799_v4 = vld [vmem:[%s1207_s1 + $0x14] ss:$8 sps:$4 sm:$0xff]  }
   0x2   :  { %v795_v1 = vld [vmem:[%s1207_s1 + $0x104] ss:$8 sps:$4 sm:$0xff]   ;;  %504 = vmatprep.subr.bf16.mxu1 %v793_v0  ;;  %v798_v3 = vld [vmem:[%s1207_s1 + $0x100] ss:$8 sps:$4 sm:$0xff]   ;;  %v801_v5 = vld [vmem:[%s1207_s1 + $0x114] ss:$8 sps:$4 sm:$0xff]  }
   0x3   :  { %557 = vmatprep.subr.bf16.mxu0 %v795_v1  ;;  %505 = vmatpush1.bf16.msra.mxu1 %v797_v2  ;;  %v803_v6 = vld [vmem:[%s1207_s1 + $0x10] ss:$8 sps:$4 sm:$0xff]   ;;  %v805_v8 = vld [vmem:[%s1207_s1 + $0x24] ss:$8 sps:$4 sm:$0xff]   ;;  %v809_v10 = vld [vmem:[%s1207_s1 + $0x20] ss:$8 sps:$4 sm:$0xff]  }
   0x4   :  { %558 = vmatpush1.bf16.msra.mxu0 %v798_v3  ;;  %506 = vmatprep.subr.bf16.mxu1 %v799_v4  ;;  %v804_v7 = vld [vmem:[%s1207_s1 + $0x110] ss:$8 sps:$4 sm:$0xff]   ;;  %v807_v9 = vld [vmem:[%s1207_s1 + $0x124] ss:$8 sps:$4 sm:$0xff]   ;;  %v810_v11 = vld [vmem:[%s1207_s1 + $0x120] ss:$8 sps:$4 sm:$0xff]  }
   0x5   :  { %559 = vmatprep.subr.bf16.mxu0 %v801_v5  ;;  %v811_v12 = vld [vmem:[%s1207_s1 + $0x34] ss:$8 sps:$4 sm:$0xff]   ;;  %v815_v14 = vld [vmem:[%s1207_s1 + $0x30] ss:$8 sps:$4 sm:$0xff]   ;;  %v817_v16 = vld [vmem:[%s1207_s1 + $0x44] ss:$8 sps:$4 sm:$0xff]  }
   0x6   :  { %v813_v13 = vld [vmem:[%s1207_s1 + $0x134] ss:$8 sps:$4 sm:$0xff]   ;;  %v816_v15 = vld [vmem:[%s1207_s1 + $0x130] ss:$8 sps:$4 sm:$0xff]   ;;  %v819_v17 = vld [vmem:[%s1207_s1 + $0x144] ss:$8 sps:$4 sm:$0xff]  }
   0x7   :  { %507 = vmatpush1.bf16.msra.mxu1 %v803_v6  ;;  %v821_v18 = vld [vmem:[%s1207_s1 + $0x40] ss:$8 sps:$4 sm:$0xff]   ;;  %v823_v20 = vld [vmem:[%s1207_s1 + $0x54] ss:$8 sps:$4 sm:$0xff]   ;;  %v827_v22 = vld [vmem:[%s1207_s1 + $0x50] ss:$8 sps:$4 sm:$0xff]  }
   0x8   :  { %560 = vmatpush1.bf16.msra.mxu0 %v804_v7  ;;  %508 = vmatprep.subr.bf16.mxu1 %v805_v8  ;;  %v822_v19 = vld [vmem:[%s1207_s1 + $0x140] ss:$8 sps:$4 sm:$0xff]   ;;  %v825_v21 = vld [vmem:[%s1207_s1 + $0x154] ss:$8 sps:$4 sm:$0xff]   ;;  %v828_v23 = vld [vmem:[%s1207_s1 + $0x150] ss:$8 sps:$4 sm:$0xff]  }
   0x9   :  { %561 = vmatprep.subr.bf16.mxu0 %v807_v9  ;;  %v829_v24 = vld [vmem:[%s1207_s1 + $0x64] ss:$8 sps:$4 sm:$0xff]   ;;  %v833_v26 = vld [vmem:[%s1207_s1 + $0x60] ss:$8 sps:$4 sm:$0xff]   ;;  %v835_v28 = vld [vmem:[%s1207_s1 + $0x74] ss:$8 sps:$4 sm:$0xff]  }
   0xa   :  { %v831_v25 = vld [vmem:[%s1207_s1 + $0x164] ss:$8 sps:$4 sm:$0xff]   ;;  %v834_v27 = vld [vmem:[%s1207_s1 + $0x160] ss:$8 sps:$4 sm:$0xff]   ;;  %v837_v29 = vld [vmem:[%s1207_s1 + $0x174] ss:$8 sps:$4 sm:$0xff]  }
   0xb   :  { %509 = vmatpush1.bf16.msra.mxu1 %v809_v10  ;;  %v839_v30 = vld [vmem:[%s1207_s1 + $0x70] ss:$8 sps:$4 sm:$0xff]   ;;  %v841_v32 = vld [vmem:[%s1207_s1 + $0x84] ss:$8 sps:$4 sm:$0xff]   ;;  %v845_v34 = vld [vmem:[%s1207_s1 + $0x80] ss:$8 sps:$4 sm:$0xff]  }
   0xc   :  { %562 = vmatpush1.bf16.msra.mxu0 %v810_v11  ;;  %510 = vmatprep.subr.bf16.mxu1 %v811_v12  ;;  %v840_v31 = vld [vmem:[%s1207_s1 + $0x170] ss:$8 sps:$4 sm:$0xff]   ;;  %v843_v33 = vld [vmem:[%s1207_s1 + $0x184] ss:$8 sps:$4 sm:$0xff]   ;;  %v846_v35 = vld [vmem:[%s1207_s1 + $0x180] ss:$8 sps:$4 sm:$0xff]  }
   0xd   :  { %563 = vmatprep.subr.bf16.mxu0 %v813_v13  ;;  %v847_v36 = vld [vmem:[%s1207_s1 + $0x94] ss:$8 sps:$4 sm:$0xff]   ;;  %v851_v38 = vld [vmem:[%s1207_s1 + $0x90] ss:$8 sps:$4 sm:$0xff]   ;;  %v853_v40 = vld [vmem:[%s1207_s1 + $0xa4] ss:$8 sps:$4 sm:$0xff]  }
   0xe   :  { %v849_v37 = vld [vmem:[%s1207_s1 + $0x194] ss:$8 sps:$4 sm:$0xff]   ;;  %v852_v39 = vld [vmem:[%s1207_s1 + $0x190] ss:$8 sps:$4 sm:$0xff]   ;;  %v855_v41 = vld [vmem:[%s1207_s1 + $0x1a4] ss:$8 sps:$4 sm:$0xff]  }
   0xf   :  { %511 = vmatpush1.bf16.msra.mxu1 %v815_v14  ;;  %v857_v42 = vld [vmem:[%s1207_s1 + $0xa0] ss:$8 sps:$4 sm:$0xff]   ;;  %v859_v44 = vld [vmem:[%s1207_s1 + $0xb4] ss:$8 sps:$4 sm:$0xff]   ;;  %v863_v46 = vld [vmem:[%s1207_s1 + $0xb0] ss:$8 sps:$4 sm:$0xff]  }
  0x10   :  { %564 = vmatpush1.bf16.msra.mxu0 %v816_v15  ;;  %512 = vmatprep.subr.bf16.mxu1 %v817_v16  ;;  %v858_v43 = vld [vmem:[%s1207_s1 + $0x1a0] ss:$8 sps:$4 sm:$0xff]   ;;  %v861_v45 = vld [vmem:[%s1207_s1 + $0x1b4] ss:$8 sps:$4 sm:$0xff]   ;;  %v864_v47 = vld [vmem:[%s1207_s1 + $0x1b0] ss:$8 sps:$4 sm:$0xff]   ;;  %v97_v15 = vlaneseq }
  0x11   :  { %565 = vmatprep.subr.bf16.mxu0 %v819_v17  ;;  %v865_v48 = vld [vmem:[%s1207_s1 + $0xc4] ss:$8 sps:$4 sm:$0xff]   ;;  %v869_v52 = vld [vmem:[%s1207_s1 + $0xc0] ss:$8 sps:$4 sm:$0xff]   ;;  %v871_v54 = vld [vmem:[%s1207_s1 + $0xd4] ss:$8 sps:$4 sm:$0xff]  }
  0x12   :  { %v891_v49 = vld [vmem:[%s1208_s0 + $0x4] ss:$20 sps:$4 sm:$0xff]   ;;  %v894_v51 = vld [vmem:[%s1208_s0 + $0xc] ss:$20 sps:$4 sm:$0xff]   ;;  %v873_v55 = vld [vmem:[%s1207_s1 + $0x1d4] ss:$8 sps:$4 sm:$0xff]  }
  0x13   :  { %513 = vmatpush1.bf16.msra.mxu1 %v821_v18  ;;  %v867_v50 = vld [vmem:[%s1207_s1 + $0x1c4] ss:$8 sps:$4 sm:$0xff]   ;;  %536 = vmatprep.mubr.bf16.mxu1 %v891_v49  ;;  %v870_v53 = vld [vmem:[%s1207_s1 + $0x1c0] ss:$8 sps:$4 sm:$0xff]   ;;  %v875_v56 = vld [vmem:[%s1207_s1 + $0xd0] ss:$8 sps:$4 sm:$0xff]  }
  0x14   :  { %566 = vmatpush1.bf16.msra.mxu0 %v822_v19  ;;  %514 = vmatprep.subr.bf16.mxu1 %v823_v20  ;;  %v876_v57 = vld [vmem:[%s1207_s1 + $0x1d0] ss:$8 sps:$4 sm:$0xff]   ;;  %v877_v58 = vld [vmem:[%s1207_s1 + $0xe4] ss:$8 sps:$4 sm:$0xff]   ;;  %v881_v60 = vld [vmem:[%s1207_s1 + $0xe0] ss:$8 sps:$4 sm:$0xff]  }
  0x15   :  { %567 = vmatprep.subr.bf16.mxu0 %v825_v21  ;;  %589 = vmatprep.mubr.bf16.mxu0 %v894_v51  ;;  %v879_v59 = vld [vmem:[%s1207_s1 + $0x1e4] ss:$8 sps:$4 sm:$0xff]   ;;  %v882_v61 = vld [vmem:[%s1207_s1 + $0x1e0] ss:$8 sps:$4 sm:$0xff]   ;;  %v883_v62 = vld [vmem:[%s1207_s1 + $0xf4] ss:$8 sps:$4 sm:$0xff]  }
  0x16   :  { %v885_v63 = vld [vmem:[%s1207_s1 + $0x1f4] ss:$8 sps:$4 sm:$0xff]   ;;  %v887_v0 = vld [vmem:[%s1207_s1 + $0xf0] ss:$8 sps:$4 sm:$0xff]   ;;  %v897_v2 = vld [vmem:[%s1207_s1 + $0x204] ss:$8 sps:$4 sm:$0xff]  }
  0x17   :  { %515 = vmatpush1.bf16.msra.mxu1 %v827_v22  ;;  %v888_v1 = vld [vmem:[%s1207_s1 + $0x1f0] ss:$8 sps:$4 sm:$0xff]   ;;  %v889_v3 = vld [vmem:[%s1208_s0] ss:$20 sps:$4 sm:$0xff]   ;;  %v892_v4 = vld [vmem:[%s1208_s0 + $0x8] ss:$20 sps:$4 sm:$0xff]  }
  0x18   :  { %568 = vmatpush1.bf16.msra.mxu0 %v828_v23  ;;  %516 = vmatprep.subr.bf16.mxu1 %v829_v24  ;;  %v895_v5 = vld [vmem:[%s1207_s1 + $0x200] ss:$8 sps:$4 sm:$0xff]   ;;  %v906_v8 = vld [vmem:[%s1207_s1 + $0x214] ss:$8 sps:$4 sm:$0xff]   ;;  %v904_v9 = vld [vmem:[%s1207_s1 + $0x210] ss:$8 sps:$4 sm:$0xff]  }
  0x19   :  { %569 = vmatprep.subr.bf16.mxu0 %v831_v25  ;;  %v898_v6 = vld [vmem:[%s1208_s0 + $0x2c] ss:$20 sps:$4 sm:$0xff]   ;;  %v900_v7 = vld [vmem:[%s1208_s0 + $0x34] ss:$20 sps:$4 sm:$0xff]   ;;  %v903_v11 = vld [vmem:[%s1208_s0 + $0x30] ss:$20 sps:$4 sm:$0xff]  }
  0x1a   :  { %v902_v10 = vld [vmem:[%s1208_s0 + $0x28] ss:$20 sps:$4 sm:$0xff]   ;;  %v925_v12 = vmov 0   ;;  %v907_v13 = vld [vmem:[%s1208_s0 + $0x10] ss:$20 sps:$4 sm:$0xff]   ;;  %v98_v16 = vshrl.u32 %v97_v15, 7 }
  0x1b   :  { %517 = vmatpush1.bf16.msra.mxu1 %v833_v26  ;;  %v908_v14 = vld [vmem:[%s1208_s0 + $0x38] ss:$20 sps:$4 sm:$0xff]   ;;  %v95_v22 = vld [vmem:[%s1209_s2] sm:$0x3] }
  0x1c   :  { %570 = vmatpush1.bf16.msra.mxu0 %v834_v27  ;;  %518 = vmatprep.subr.bf16.mxu1 %v835_v28  ;;  %v99_v20 = vsub.s32 0, %v98_v16  ;;  %v103_v23 = vsub.s32 1, %v98_v16 }
  0x1d   :  { %571 = vmatprep.subr.bf16.mxu0 %v837_v29 }
  0x1e   :  { %v100_v24 = vrot.slane %v95_v22, %v99_v20  ;;  %v104_v25 = vrot.slane %v95_v22, %v103_v23 }
  0x1f   :  { %519 = vmatpush1.bf16.msra.mxu1 %v839_v30 }
  0x20   :  { %572 = vmatpush1.bf16.msra.mxu0 %v840_v31  ;;  %520 = vmatprep.subr.bf16.mxu1 %v841_v32 }
  0x21   :  { %573 = vmatprep.subr.bf16.mxu0 %v843_v33 }
  0x23   :  { %521 = vmatpush1.bf16.msra.mxu1 %v845_v34 }
  0x24   :  { %574 = vmatpush1.bf16.msra.mxu0 %v846_v35  ;;  %522 = vmatprep.subr.bf16.mxu1 %v847_v36 }
  0x25   :  { %575 = vmatprep.subr.bf16.mxu0 %v849_v37 }
  0x27   :  { %523 = vmatpush1.bf16.msra.mxu1 %v851_v38 }
  0x28   :  { %576 = vmatpush1.bf16.msra.mxu0 %v852_v39  ;;  %524 = vmatprep.subr.bf16.mxu1 %v853_v40 }
  0x29   :  { %577 = vmatprep.subr.bf16.mxu0 %v855_v41 }
  0x2b   :  { %525 = vmatpush1.bf16.msra.mxu1 %v857_v42 }
  0x2c   :  { %578 = vmatpush1.bf16.msra.mxu0 %v858_v43  ;;  %526 = vmatprep.subr.bf16.mxu1 %v859_v44 }
  0x2d   :  { %579 = vmatprep.subr.bf16.mxu0 %v861_v45 }
  0x2f   :  { %527 = vmatpush1.bf16.msra.mxu1 %v863_v46 }
  0x30   :  { %580 = vmatpush1.bf16.msra.mxu0 %v864_v47  ;;  %528 = vmatprep.subr.bf16.mxu1 %v865_v48 }
  0x31   :  { %581 = vmatprep.subr.bf16.mxu0 %v867_v50 }
  0x33   :  { %529 = vmatpush1.bf16.msra.mxu1 %v869_v52 }
  0x34   :  { %582 = vmatpush1.bf16.msra.mxu0 %v870_v53  ;;  %530 = vmatprep.subr.bf16.mxu1 %v871_v54 }
  0x35   :  { %583 = vmatprep.subr.bf16.mxu0 %v873_v55 }
  0x37   :  { %531 = vmatpush1.bf16.msra.mxu1 %v875_v56 }
  0x38   :  { %584 = vmatpush1.bf16.msra.mxu0 %v876_v57  ;;  %532 = vmatprep.subr.bf16.mxu1 %v877_v58 }
  0x39   :  { %585 = vmatprep.subr.bf16.mxu0 %v879_v59 }
  0x3b   :  { %533 = vmatpush1.bf16.msra.mxu1 %v881_v60 }
  0x3c   :  { %586 = vmatpush1.bf16.msra.mxu0 %v882_v61  ;;  %534 = vmatprep.subr.bf16.mxu1 %v883_v62 }
  0x3d   :  { %587 = vmatprep.subr.bf16.mxu0 %v885_v63 }
  0x3f   :  { %535 = vmatpush1.bf16.msra.mxu1 %v887_v0 }
  0x40   :  { %588 = vmatpush1.bf16.msra.mxu0 %v888_v1  ;;  %764 = vmatprep.subr.bf16.mxu1 %v897_v2 }
  0x41   :  { %610 = vmatprep.subr.bf16.mxu0 %v897_v2 }
  0x42   :  { %537 = vmatmul.mubr.bf16.vlgmr.msra.gmra.mrb[0].mxu1 %v889_v3 }
  0x43   :  { %590 = vmatmul.mubr.bf16.vlgmr.msra.gmra.mrb[0].mxu0 %v892_v4  ;;  %766 = vmatpush1.bf16.msra.mxu1 %v895_v5 }
  0x44   :  { %611 = vmatpush1.bf16.msra.mxu0 %v895_v5  ;;  %546 = vmatprep.mubr.bf16.mxu1 %v898_v6 }
  0x45   :  { %599 = vmatprep.mubr.bf16.mxu0 %v900_v7  ;;  %612 = vmatprep.subr.bf16.mxu0 %v906_v8 }
  0x46   :  { %765 = vmatprep.subr.bf16.mxu1 %v906_v8 }
  0x47   :  { %767 = vmatpush1.bf16.msra.mxu1 %v904_v9 }
  0x48   :  { %613 = vmatpush1.bf16.msra.mxu0 %v904_v9 }
  0x4a   :  { %547 = vmatmul.mubr.bf16.gmra.mrb[4].mxu1 %v902_v10 }
  0x4b   :  { %600 = vmatmul.mubr.bf16.gmra.mrb[4].mxu0 %v903_v11  ;;  %652 = vmatprep.mubr.bf16.mxu1 %v925_v12 }
  0x4c   :  { %642 = vmatprep.mubr.bf16.mxu0 %v925_v12 }
  0x52   :  { %763 = vmatmul.mubr.msk.bf16.vlgmr.msra.gmra.mrb[8].mxu1 %vm497_vm0, %v908_v14 }
  0x53   :  { %762 = vmatmul.mubr.msk.bf16.vlgmr.msra.gmra.mrb[0].mxu0 %vm497_vm0, %v907_v13 }
 0x115   :  { %v538_v17 = vpop.f32.mrb[0].mxu1 }
 0x116   :  { %v540_v18 = vpop.f32.mrb[1].mxu1  ;;  %v539_v42 = vadd.f32 %v538_v17, %v100_v24 }
 0x117   :  { %v542_v19 = vpop.f32.mrb[2].mxu1  ;;  %v541_v43 = vadd.f32 %v540_v18, %v104_v25 }
 0x118   :  { %v544_v21 = vpop.f32.mrb[3].mxu1  ;;  %v543_v46 = vadd.f32 %v542_v19, %v100_v24 }
 0x119   :  { %v545_v51 = vadd.f32 %v544_v21, %v104_v25 }
 0x11d   :  { %v548_v26 = vpop.f32.mrb[4].mxu1 }
 0x11e   :  { %v601_v27 = vpop.f32.mrb[4].mxu0  ;;  %v549_v28 = vadd.f32 %v548_v26, %v100_v24  ;;  %v550_v29 = vpop.f32.mrb[5].mxu1 }
 0x11f   :  { %v603_v30 = vpop.f32.mrb[5].mxu0  ;;  %v551_v31 = vadd.f32 %v550_v29, %v104_v25  ;;  %v552_v32 = vpop.f32.mrb[6].mxu1 }
 0x120   :  { %v605_v33 = vpop.f32.mrb[6].mxu0  ;;  %v602_v34 = vadd.f32 %v601_v27, %v549_v28  ;;  %v553_v35 = vadd.f32 %v552_v32, %v100_v24  ;;  %v554_v36 = vpop.f32.mrb[7].mxu1 }
 0x121   :  { %v607_v37 = vpop.f32.mrb[7].mxu0  ;;  %v604_v38 = vadd.f32 %v603_v30, %v551_v31  ;;  %v555_v39 = vadd.f32 %v554_v36, %v104_v25 }
 0x122   :  { %v606_v40 = vadd.f32 %v605_v33, %v553_v35 }
 0x123   :  { %v608_v41 = vadd.f32 %v607_v37, %v555_v39 }
 0x125   :  { %v654_v45 = vpop.f32.mrb[8].mxu1 }
 0x126   :  { %v644_v44 = vpop.f32.mrb[0].mxu0  ;;  %v655_v48 = vadd.f32 %v654_v45, %v602_v34  ;;  %v656_v50 = vpop.f32.mrb[9].mxu1 }
 0x127   :  { %v769_v47 = vadd.f32 %v644_v44, %v539_v42  ;;  %v646_v49 = vpop.f32.mrb[1].mxu0  ;;  %v657_v53 = vadd.f32 %v656_v50, %v604_v38  ;;  %v658_v55 = vpop.f32.mrb[10].mxu1 }
 0x128   :  { %v771_v52 = vadd.f32 %v646_v49, %v541_v43  ;;  %v648_v54 = vpop.f32.mrb[2].mxu0  ;;  %v659_v57 = vadd.f32 %v658_v55, %v606_v40  ;;  %v660_v59 = vpop.f32.mrb[11].mxu1 }
 0x129   :  { %909 = vtanh.f32 %v769_v47  ;;  %v773_v56 = vadd.f32 %v648_v54, %v543_v46  ;;  %v650_v58 = vpop.f32.mrb[3].mxu0  ;;  %v661_v61 = vadd.f32 %v660_v59, %v608_v41 }
 0x12a   :  { %911 = vtanh.f32 %v655_v48  ;;  %v775_v60 = vadd.f32 %v650_v58, %v545_v51 }
 0x12b   :  { %913 = vtanh.f32 %v771_v52 }
 0x12c   :  { %915 = vtanh.f32 %v657_v53 }
 0x12d   :  { %917 = vtanh.f32 %v773_v56 }
 0x12e   :  { %919 = vtanh.f32 %v659_v57 }
 0x12f   :  { %921 = vtanh.f32 %v775_v60 }
 0x130   :  { %923 = vtanh.f32 %v661_v61 }
 0x133   :  { %v910_v62 = vpop.eup %909 }
 0x134   :  { %v912_v63 = vpop.eup %911  ;;  %671 = vst [vmem:[%s1210_s3] sm:$0xff] %v910_v62 }
 0x135   :  { %v914_v0 = vpop.eup %913  ;;  %676 = vst [vmem:[%s1210_s3 + $0x20] sm:$0xff] %v912_v63 }
 0x136   :  { %v916_v1 = vpop.eup %915  ;;  %673 = vst.msk [vmem:[%s1210_s3 + $0x8] sm:$0xff] %vm672_vm1, %v914_v0 }
 0x137   :  { %v918_v2 = vpop.eup %917  ;;  %677 = vst.msk [vmem:[%s1210_s3 + $0x28] sm:$0xff] %vm672_vm1, %v916_v1 }
 0x138   :  { %v920_v3 = vpop.eup %919  ;;  %674 = vst [vmem:[%s1210_s3 + $0x10] sm:$0xff] %v918_v2 }
 0x139   :  { %v922_v4 = vpop.eup %921  ;;  %678 = vst [vmem:[%s1210_s3 + $0x30] sm:$0xff] %v920_v3 }
 0x13a   :  { %v924_v5 = vpop.eup %923  ;;  %675 = vst.msk [vmem:[%s1210_s3 + $0x18] sm:$0xff] %vm672_vm1, %v922_v4 }
 0x13b   :  { %679 = vst.msk [vmem:[%s1210_s3 + $0x38] sm:$0xff] %vm672_vm1, %v924_v5 }

</bundles_post_ra>
